<compile_context>
chip_gen: v5e
topology: v5e:2x2
jax: 0.10.0
libtpu: 0.0.40
codegen_flags: <defaults>
</compile_context>

<pallas_src>
import functools
import numpy as np
import jax
import jax.numpy as jnp
from jax import lax
from jax.experimental import pallas as pl
from jax.experimental.pallas import tpu as pltpu


@functools.lru_cache(maxsize=None)
def _tap_constants(H, W, B):
    """Static lane-shift amounts and pad-1 border masks for a 3x3 conv whose
    spatial grid is flattened to a (B*H*W,) lane axis (lane = b*H*W + y*W + x)."""
    shifts = []
    masks = np.zeros((9, H * W), np.float32)
    for ky in range(3):
        for kx in range(3):
            t = ky * 3 + kx
            shifts.append((ky - 1) * W + (kx - 1))
            valid = np.ones((H, W), np.float32)
            if ky == 0:
                valid[0, :] = 0.0
            if ky == 2:
                valid[H - 1, :] = 0.0
            if kx == 0:
                valid[:, 0] = 0.0
            if kx == 2:
                valid[:, W - 1] = 0.0
            masks[t] = valid.reshape(-1)
    tiled = np.tile(masks, (1, B))  # (9, B*H*W): mask depends only on pos in image
    return tuple(shifts), jnp.asarray(tiled)


def _make_kernel(shifts, M):
    """Kernel closure with the (static) tap shifts and lane count baked in."""

    def kernel(m_ref, tap_ref, w1_ref, b1_ref, w2_ref, b2_ref, w3_ref, b3_ref,
               o_ref):
        # combined mask: OR over the N instance masks (sublane reduce) -> (1, M)
        comb = (jnp.sum(m_ref[...], axis=0, keepdims=True) > 0.0)
        comb = comb.astype(jnp.float32)
        tap = tap_ref[...]                                   # (9, M) border masks

        def shifted(x, s):
            # shifted[p] = x[p + s]   (wrap-around lanes are masked by `tap`)
            if s == 0:
                return x
            return pltpu.roll(x, shift=(-s) % M, axis=1)

        # ---- conv1: 1 -> 16, 3x3, pad 1 -----------------------------------
        # im2col rows via lane rolls (XLU), then one MXU matmul (16,9)@(9,M).
        p1 = jnp.concatenate([shifted(comb, s) for s in shifts], axis=0) * tap
        a1 = jnp.dot(w1_ref[...], p1,
                     preferred_element_type=jnp.float32) + b1_ref[...]
        a1 = jnp.maximum(a1, 0.0)                            # (16, M)

        # ---- conv2: 16 -> 32, 3x3, pad 1 (stride-2 subsample done outside) -
        # fused K = 9*16 = 144 contraction: (32,144) @ (144, M)
        p2 = jnp.concatenate(
            [shifted(a1, s) * tap[t:t + 1, :] for t, s in enumerate(shifts)],
            axis=0)                                          # (144, M)
        a2 = jnp.dot(w2_ref[...], p2,
                     preferred_element_type=jnp.float32) + b2_ref[...]
        a2 = jnp.maximum(a2, 0.0)                            # (32, M)

        # ---- conv3: 32 -> hidden, 1x1 -------------------------------------
        out = jnp.dot(w3_ref[...], a2,
                      preferred_element_type=jnp.float32) + b3_ref[...]
        o_ref[...] = out.astype(o_ref.dtype)                 # (hidden, M) lane-dense

    return kernel


@jax.jit
def coarse_mask_encoder_forward(coarse_masks, params):
    B, N, H, W = coarse_masks.shape
    hidden = params["w3"].shape[0]
    M = B * H * W

    shifts, tap = _tap_constants(H, W, B)

    # Glue (layout only, no compute): channels-in-sublanes, batch*spatial-in-lanes.
    masks_cm = coarse_masks.transpose(1, 0, 2, 3).reshape(N, M)       # (N, M)
    w1k = params["w1"].reshape(16, 9)                                  # (C1, 9)
    w2k = params["w2"].transpose(0, 2, 3, 1).reshape(32, 9 * 16)       # (C2, 9*C1)
    w3k = params["w3"].reshape(hidden, 32)                             # (hid, C2)
    b1k = params["b1"].reshape(16, 1)
    b2k = params["b2"].reshape(32, 1)
    b3k = params["b3"].reshape(hidden, 1)

    kernel = _make_kernel(shifts, M)

    full = pl.pallas_call(
        kernel,
        out_shape=jax.ShapeDtypeStruct((hidden, M), jnp.float32),
        grid=(1,),
        in_specs=[
            pl.BlockSpec((N, M), lambda i: (0, 0)),
            pl.BlockSpec((9, M), lambda i: (0, 0)),
            pl.BlockSpec((16, 9), lambda i: (0, 0)),
            pl.BlockSpec((16, 1), lambda i: (0, 0)),
            pl.BlockSpec((32, 9 * 16), lambda i: (0, 0)),
            pl.BlockSpec((32, 1), lambda i: (0, 0)),
            pl.BlockSpec((hidden, 32), lambda i: (0, 0)),
            pl.BlockSpec((hidden, 1), lambda i: (0, 0)),
        ],
        out_specs=pl.BlockSpec((hidden, M), lambda i: (0, 0)),
        compiler_params=pltpu.CompilerParams(
            dimension_semantics=("arbitrary",)),
    )(masks_cm, tap, w1k, b1k, w2k, b2k, w3k, b3k)

    # (hidden, B*H*W) -> NCHW, then the stride-2 pick of the pad-1 conv2 grid.
    out = full.reshape(hidden, B, H, W).transpose(1, 0, 2, 3)
    return out[:, :, 0::2, 0::2]


def init_params(key, hidden_dim):
    """Deterministic synthetic weights matching nn.Conv2d shapes (OIHW)."""
    k = jax.random.split(key, 6)
    return dict(
        w1=jax.random.normal(k[0], (16, 1, 3, 3), jnp.float32) * 0.2,
        b1=jax.random.normal(k[1], (16,), jnp.float32) * 0.05,
        w2=jax.random.normal(k[2], (32, 16, 3, 3), jnp.float32) * 0.1,
        b2=jax.random.normal(k[3], (32,), jnp.float32) * 0.05,
        w3=jax.random.normal(k[4], (hidden_dim, 32, 1, 1), jnp.float32) * 0.1,
        b3=jax.random.normal(k[5], (hidden_dim,), jnp.float32) * 0.05,
    )


def reference_forward(coarse_masks, params):
    """Pure-JAX reference mirroring the PyTorch module (NCHW)."""
    combined = (jnp.sum(coarse_masks, axis=1, keepdims=True) > 0).astype(jnp.float32)
    dn = ("NCHW", "OIHW", "NCHW")
    hp = lax.Precision.HIGHEST
    y = lax.conv_general_dilated(combined, params["w1"], (1, 1), ((1, 1), (1, 1)),
                                 dimension_numbers=dn, precision=hp)
    y = jnp.maximum(y + params["b1"][None, :, None, None], 0.0)
    y = lax.conv_general_dilated(y, params["w2"], (2, 2), ((1, 1), (1, 1)),
                                 dimension_numbers=dn, precision=hp)
    y = jnp.maximum(y + params["b2"][None, :, None, None], 0.0)
    y = lax.conv_general_dilated(y, params["w3"], (1, 1), ((0, 0), (0, 0)),
                                 dimension_numbers=dn, precision=hp)
    return y + params["b3"][None, :, None, None]


if __name__ == "__main__":
    B, N, H, W, hidden_dim = 2, 4, 16, 16, 32

    key = jax.random.PRNGKey(0)
    kp, km = jax.random.split(key)
    params = init_params(kp, hidden_dim)
    coarse_masks = jax.random.bernoulli(km, 0.3, (B, N, H, W)).astype(jnp.float32)

    out = coarse_mask_encoder_forward(coarse_masks, params)
    out = jax.block_until_ready(out)
    assert out.shape == (B, hidden_dim, H // 2, W // 2)

    ref = reference_forward(coarse_masks, params)
    np.testing.assert_allclose(np.asarray(out), np.asarray(ref), rtol=2e-2, atol=5e-3)

    print("KERNEL_OK")
</pallas_src>

<mosaic_0001>
module attributes {stable_mosaic.version = 11 : i64} {
  func.func @kernel(%arg0: i32, %arg1: memref<4x512xf32, #tpu.memory_space<vmem>>, %arg2: memref<9x512xf32, #tpu.memory_space<vmem>>, %arg3: memref<16x9xf32, #tpu.memory_space<vmem>>, %arg4: memref<16x1xf32, #tpu.memory_space<vmem>>, %arg5: memref<32x144xf32, #tpu.memory_space<vmem>>, %arg6: memref<32x1xf32, #tpu.memory_space<vmem>>, %arg7: memref<32x32xf32, #tpu.memory_space<vmem>>, %arg8: memref<32x1xf32, #tpu.memory_space<vmem>>, %arg9: memref<32x512xf32, #tpu.memory_space<vmem>>) attributes {dimension_semantics = [#tpu.dimension_semantics<arbitrary>], iteration_bounds = array<i64: 1>, scalar_prefetch = 0 : i64, scratch_operands = 0 : i64, tpu.core_type = #tpu.core_type<tc>, window_params = [{pipeline_mode = #tpu.pipeline_mode<synchronous>, transform_indices = @transform_0, window_bounds = array<i64: 4, 512>}, {pipeline_mode = #tpu.pipeline_mode<synchronous>, transform_indices = @transform_1, window_bounds = array<i64: 9, 512>}, {pipeline_mode = #tpu.pipeline_mode<synchronous>, transform_indices = @transform_2, window_bounds = array<i64: 16, 9>}, {pipeline_mode = #tpu.pipeline_mode<synchronous>, transform_indices = @transform_3, window_bounds = array<i64: 16, 1>}, {pipeline_mode = #tpu.pipeline_mode<synchronous>, transform_indices = @transform_4, window_bounds = array<i64: 32, 144>}, {pipeline_mode = #tpu.pipeline_mode<synchronous>, transform_indices = @transform_5, window_bounds = array<i64: 32, 1>}, {pipeline_mode = #tpu.pipeline_mode<synchronous>, transform_indices = @transform_6, window_bounds = array<i64: 32, 32>}, {pipeline_mode = #tpu.pipeline_mode<synchronous>, transform_indices = @transform_7, window_bounds = array<i64: 32, 1>}, {pipeline_mode = #tpu.pipeline_mode<synchronous>, transform_indices = @transform_8, window_bounds = array<i64: 32, 512>}]} {
    %c0 = arith.constant 0 : index
    %c0_0 = arith.constant 0 : index
    %0 = vector.load %arg1[%c0, %c0_0] : memref<4x512xf32, #tpu.memory_space<vmem>>, vector<4x512xf32>
    %cst = arith.constant dense<0.000000e+00> : vector<512xf32>
    %1 = vector.multi_reduction <add>, %0, %cst [0] : vector<4x512xf32> to vector<512xf32>
    %2 = vector.shape_cast %1 : vector<512xf32> to vector<1x512xf32>
    %cst_1 = arith.constant 0.000000e+00 : f32
    %3 = vector.broadcast %cst_1 : f32 to vector<1x512xf32>
    %4 = arith.cmpf ogt, %2, %3 : vector<1x512xf32>
    %5 = arith.extui %4 : vector<1x512xi1> to vector<1x512xi32>
    %6 = arith.sitofp %5 : vector<1x512xi32> to vector<1x512xf32>
    %c0_2 = arith.constant 0 : index
    %c0_3 = arith.constant 0 : index
    %7 = vector.load %arg2[%c0_2, %c0_3] : memref<9x512xf32, #tpu.memory_space<vmem>>, vector<9x512xf32>
    %c17_i32 = arith.constant 17 : i32
    %8 = tpu.dynamic_rotate %6 by %c17_i32 dim 1 : vector<1x512xf32>, i32 -> vector<1x512xf32>
    %c16_i32 = arith.constant 16 : i32
    %9 = tpu.dynamic_rotate %6 by %c16_i32 dim 1 : vector<1x512xf32>, i32 -> vector<1x512xf32>
    %c15_i32 = arith.constant 15 : i32
    %10 = tpu.dynamic_rotate %6 by %c15_i32 dim 1 : vector<1x512xf32>, i32 -> vector<1x512xf32>
    %c1_i32 = arith.constant 1 : i32
    %11 = tpu.dynamic_rotate %6 by %c1_i32 dim 1 : vector<1x512xf32>, i32 -> vector<1x512xf32>
    %c511_i32 = arith.constant 511 : i32
    %12 = tpu.dynamic_rotate %6 by %c511_i32 dim 1 : vector<1x512xf32>, i32 -> vector<1x512xf32>
    %c497_i32 = arith.constant 497 : i32
    %13 = tpu.dynamic_rotate %6 by %c497_i32 dim 1 : vector<1x512xf32>, i32 -> vector<1x512xf32>
    %c496_i32 = arith.constant 496 : i32
    %14 = tpu.dynamic_rotate %6 by %c496_i32 dim 1 : vector<1x512xf32>, i32 -> vector<1x512xf32>
    %c495_i32 = arith.constant 495 : i32
    %15 = tpu.dynamic_rotate %6 by %c495_i32 dim 1 : vector<1x512xf32>, i32 -> vector<1x512xf32>
    %16 = tpu.concatenate %8, %9, %10, %11, %6, %12, %13, %14, %15 in 0 : vector<1x512xf32>, vector<1x512xf32>, vector<1x512xf32>, vector<1x512xf32>, vector<1x512xf32>, vector<1x512xf32>, vector<1x512xf32>, vector<1x512xf32>, vector<1x512xf32> -> vector<9x512xf32>
    %17 = arith.mulf %16, %7 : vector<9x512xf32>
    %c0_4 = arith.constant 0 : index
    %c0_5 = arith.constant 0 : index
    %18 = vector.load %arg3[%c0_4, %c0_5] : memref<16x9xf32, #tpu.memory_space<vmem>>, vector<16x9xf32>
    %cst_6 = arith.constant dense<0.000000e+00> : vector<16x512xf32>
    %19 = tpu.matmul %18, %17, %cst_6 {dimension_numbers = #tpu.dot_dimension_numbers<[1], [0], [0], [1], [0, 0, 1, 1], [], []>} : vector<16x9xf32>, vector<9x512xf32>, vector<16x512xf32> -> vector<16x512xf32>
    %c0_7 = arith.constant 0 : index
    %c0_8 = arith.constant 0 : index
    %20 = vector.load %arg4[%c0_7, %c0_8] : memref<16x1xf32, #tpu.memory_space<vmem>>, vector<16x1xf32>
    %21 = vector.broadcast %20 : vector<16x1xf32> to vector<16x512xf32>
    %22 = arith.addf %19, %21 : vector<16x512xf32>
    %cst_9 = arith.constant 0.000000e+00 : f32
    %23 = vector.broadcast %cst_9 : f32 to vector<16x512xf32>
    %24 = arith.maximumf %22, %23 : vector<16x512xf32>
    %c17_i32_10 = arith.constant 17 : i32
    %25 = tpu.dynamic_rotate %24 by %c17_i32_10 dim 1 : vector<16x512xf32>, i32 -> vector<16x512xf32>
    %26 = vector.extract_strided_slice %7 {offsets = [0, 0], sizes = [1, 512], strides = [1, 1]} : vector<9x512xf32> to vector<1x512xf32>
    %27 = vector.broadcast %26 : vector<1x512xf32> to vector<16x512xf32>
    %28 = arith.mulf %25, %27 : vector<16x512xf32>
    %c16_i32_11 = arith.constant 16 : i32
    %29 = tpu.dynamic_rotate %24 by %c16_i32_11 dim 1 : vector<16x512xf32>, i32 -> vector<16x512xf32>
    %30 = vector.extract_strided_slice %7 {offsets = [1, 0], sizes = [1, 512], strides = [1, 1]} : vector<9x512xf32> to vector<1x512xf32>
    %31 = vector.broadcast %30 : vector<1x512xf32> to vector<16x512xf32>
    %32 = arith.mulf %29, %31 : vector<16x512xf32>
    %c15_i32_12 = arith.constant 15 : i32
    %33 = tpu.dynamic_rotate %24 by %c15_i32_12 dim 1 : vector<16x512xf32>, i32 -> vector<16x512xf32>
    %34 = vector.extract_strided_slice %7 {offsets = [2, 0], sizes = [1, 512], strides = [1, 1]} : vector<9x512xf32> to vector<1x512xf32>
    %35 = vector.broadcast %34 : vector<1x512xf32> to vector<16x512xf32>
    %36 = arith.mulf %33, %35 : vector<16x512xf32>
    %c1_i32_13 = arith.constant 1 : i32
    %37 = tpu.dynamic_rotate %24 by %c1_i32_13 dim 1 : vector<16x512xf32>, i32 -> vector<16x512xf32>
    %38 = vector.extract_strided_slice %7 {offsets = [3, 0], sizes = [1, 512], strides = [1, 1]} : vector<9x512xf32> to vector<1x512xf32>
    %39 = vector.broadcast %38 : vector<1x512xf32> to vector<16x512xf32>
    %40 = arith.mulf %37, %39 : vector<16x512xf32>
    %41 = vector.extract_strided_slice %7 {offsets = [4, 0], sizes = [1, 512], strides = [1, 1]} : vector<9x512xf32> to vector<1x512xf32>
    %42 = vector.broadcast %41 : vector<1x512xf32> to vector<16x512xf32>
    %43 = arith.mulf %24, %42 : vector<16x512xf32>
    %c511_i32_14 = arith.constant 511 : i32
    %44 = tpu.dynamic_rotate %24 by %c511_i32_14 dim 1 : vector<16x512xf32>, i32 -> vector<16x512xf32>
    %45 = vector.extract_strided_slice %7 {offsets = [5, 0], sizes = [1, 512], strides = [1, 1]} : vector<9x512xf32> to vector<1x512xf32>
    %46 = vector.broadcast %45 : vector<1x512xf32> to vector<16x512xf32>
    %47 = arith.mulf %44, %46 : vector<16x512xf32>
    %c497_i32_15 = arith.constant 497 : i32
    %48 = tpu.dynamic_rotate %24 by %c497_i32_15 dim 1 : vector<16x512xf32>, i32 -> vector<16x512xf32>
    %49 = vector.extract_strided_slice %7 {offsets = [6, 0], sizes = [1, 512], strides = [1, 1]} : vector<9x512xf32> to vector<1x512xf32>
    %50 = vector.broadcast %49 : vector<1x512xf32> to vector<16x512xf32>
    %51 = arith.mulf %48, %50 : vector<16x512xf32>
    %c496_i32_16 = arith.constant 496 : i32
    %52 = tpu.dynamic_rotate %24 by %c496_i32_16 dim 1 : vector<16x512xf32>, i32 -> vector<16x512xf32>
    %53 = vector.extract_strided_slice %7 {offsets = [7, 0], sizes = [1, 512], strides = [1, 1]} : vector<9x512xf32> to vector<1x512xf32>
    %54 = vector.broadcast %53 : vector<1x512xf32> to vector<16x512xf32>
    %55 = arith.mulf %52, %54 : vector<16x512xf32>
    %c495_i32_17 = arith.constant 495 : i32
    %56 = tpu.dynamic_rotate %24 by %c495_i32_17 dim 1 : vector<16x512xf32>, i32 -> vector<16x512xf32>
    %57 = vector.extract_strided_slice %7 {offsets = [8, 0], sizes = [1, 512], strides = [1, 1]} : vector<9x512xf32> to vector<1x512xf32>
    %58 = vector.broadcast %57 : vector<1x512xf32> to vector<16x512xf32>
    %59 = arith.mulf %56, %58 : vector<16x512xf32>
    %60 = tpu.concatenate %28, %32, %36, %40, %43, %47, %51, %55, %59 in 0 : vector<16x512xf32>, vector<16x512xf32>, vector<16x512xf32>, vector<16x512xf32>, vector<16x512xf32>, vector<16x512xf32>, vector<16x512xf32>, vector<16x512xf32>, vector<16x512xf32> -> vector<144x512xf32>
    %c0_18 = arith.constant 0 : index
    %c0_19 = arith.constant 0 : index
    %61 = vector.load %arg5[%c0_18, %c0_19] : memref<32x144xf32, #tpu.memory_space<vmem>>, vector<32x144xf32>
    %cst_20 = arith.constant dense<0.000000e+00> : vector<32x512xf32>
    %62 = tpu.matmul %61, %60, %cst_20 {dimension_numbers = #tpu.dot_dimension_numbers<[1], [0], [0], [1], [0, 0, 1, 1], [], []>} : vector<32x144xf32>, vector<144x512xf32>, vector<32x512xf32> -> vector<32x512xf32>
    %c0_21 = arith.constant 0 : index
    %c0_22 = arith.constant 0 : index
    %63 = vector.load %arg6[%c0_21, %c0_22] : memref<32x1xf32, #tpu.memory_space<vmem>>, vector<32x1xf32>
    %64 = vector.broadcast %63 : vector<32x1xf32> to vector<32x512xf32>
    %65 = arith.addf %62, %64 : vector<32x512xf32>
    %cst_23 = arith.constant 0.000000e+00 : f32
    %66 = vector.broadcast %cst_23 : f32 to vector<32x512xf32>
    %67 = arith.maximumf %65, %66 : vector<32x512xf32>
    %c0_24 = arith.constant 0 : index
    %c0_25 = arith.constant 0 : index
    %68 = vector.load %arg7[%c0_24, %c0_25] : memref<32x32xf32, #tpu.memory_space<vmem>>, vector<32x32xf32>
    %cst_26 = arith.constant dense<0.000000e+00> : vector<32x512xf32>
    %69 = tpu.matmul %68, %67, %cst_26 {dimension_numbers = #tpu.dot_dimension_numbers<[1], [0], [0], [1], [0, 0, 1, 1], [], []>} : vector<32x32xf32>, vector<32x512xf32>, vector<32x512xf32> -> vector<32x512xf32>
    %c0_27 = arith.constant 0 : index
    %c0_28 = arith.constant 0 : index
    %70 = vector.load %arg8[%c0_27, %c0_28] : memref<32x1xf32, #tpu.memory_space<vmem>>, vector<32x1xf32>
    %71 = vector.broadcast %70 : vector<32x1xf32> to vector<32x512xf32>
    %72 = arith.addf %69, %71 : vector<32x512xf32>
    %c0_29 = arith.constant 0 : index
    %c0_30 = arith.constant 0 : index
    %73 = vector.load %arg9[%c0_29, %c0_30] : memref<32x512xf32, #tpu.memory_space<vmem>>, vector<32x512xf32>
    tpu.vector_store %arg9[%c0_29, %c0_30], %72 {strides = array<i32>} : memref<32x512xf32, #tpu.memory_space<vmem>>, vector<32x512xf32>,
    return
  }
  func.func @transform_0(%arg0: i32) -> (i32, i32) {
    %c0_i32 = arith.constant 0 : i32
    %c0_i32_0 = arith.constant 0 : i32
    %c0_i32_1 = arith.constant 0 : i32
    return %c0_i32, %c0_i32_0 : i32, i32
  }
  func.func @transform_1(%arg0: i32) -> (i32, i32) {
    %c0_i32 = arith.constant 0 : i32
    %c0_i32_0 = arith.constant 0 : i32
    %c0_i32_1 = arith.constant 0 : i32
    return %c0_i32, %c0_i32_0 : i32, i32
  }
  func.func @transform_2(%arg0: i32) -> (i32, i32) {
    %c0_i32 = arith.constant 0 : i32
    %c0_i32_0 = arith.constant 0 : i32
    %c0_i32_1 = arith.constant 0 : i32
    return %c0_i32, %c0_i32_0 : i32, i32
  }
  func.func @transform_3(%arg0: i32) -> (i32, i32) {
    %c0_i32 = arith.constant 0 : i32
    %c0_i32_0 = arith.constant 0 : i32
    %c0_i32_1 = arith.constant 0 : i32
    return %c0_i32, %c0_i32_0 : i32, i32
  }
  func.func @transform_4(%arg0: i32) -> (i32, i32) {
    %c0_i32 = arith.constant 0 : i32
    %c0_i32_0 = arith.constant 0 : i32
    %c0_i32_1 = arith.constant 0 : i32
    return %c0_i32, %c0_i32_0 : i32, i32
  }
  func.func @transform_5(%arg0: i32) -> (i32, i32) {
    %c0_i32 = arith.constant 0 : i32
    %c0_i32_0 = arith.constant 0 : i32
    %c0_i32_1 = arith.constant 0 : i32
    return %c0_i32, %c0_i32_0 : i32, i32
  }
  func.func @transform_6(%arg0: i32) -> (i32, i32) {
    %c0_i32 = arith.constant 0 : i32
    %c0_i32_0 = arith.constant 0 : i32
    %c0_i32_1 = arith.constant 0 : i32
    return %c0_i32, %c0_i32_0 : i32, i32
  }
  func.func @transform_7(%arg0: i32) -> (i32, i32) {
    %c0_i32 = arith.constant 0 : i32
    %c0_i32_0 = arith.constant 0 : i32
    %c0_i32_1 = arith.constant 0 : i32
    return %c0_i32, %c0_i32_0 : i32, i32
  }
  func.func @transform_8(%arg0: i32) -> (i32, i32) {
    %c0_i32 = arith.constant 0 : i32
    %c0_i32_0 = arith.constant 0 : i32
    %c0_i32_1 = arith.constant 0 : i32
    return %c0_i32, %c0_i32_0 : i32, i32
  }
}

</mosaic_0001>

<bundles_post_ra>
// kernel: coarse_mask_encoder_forward.1
= control target key start
LH: loop header
LB: loop body
LE: loop exit
PB: predicated region body
PF: predicated region fallthrough
CT: control target
= control target key end

     0   :  { %vm44_vm0 = vcmask 1043456   ;;  %v1374_v32 = vmov 0.0   ;;  %s1376_s9 = smov 16   ;;  %s1377_s10 = smov 127   ;;  %v101_v44 = vlaneseq  ;;  %vm271_vm9 = vcmask 1040384   ;;  %s2532_s0 = inlined_call_operand.vmem [shape: f32[4,512], index: 0, kind: input, shape index: {}]   ;;  %s2533_s3 = inlined_call_operand.vmem [shape: f32[16,1], index: 3, kind: input, shape index: {}]   ;;  %s2534_s1 = inlined_call_operand.vmem [shape: f32[9,512], index: 1, kind: input, shape index: {}]   ;;  %s2535_s2 = inlined_call_operand.vmem [shape: f32[16,9], index: 2, kind: input, shape index: {}]   ;;  %s2536_s5 = inlined_call_operand.vmem [shape: f32[32,1], index: 5, kind: input, shape index: {}]   ;;  %s2537_s7 = inlined_call_operand.vmem [shape: f32[32,1], index: 7, kind: input, shape index: {}]   ;;  %s2538_s4 = inlined_call_operand.vmem [shape: f32[32,144], index: 4, kind: input, shape index: {}]   ;;  %s2539_s6 = inlined_call_operand.vmem [shape: f32[32,32], index: 6, kind: input, shape index: {}]   ;;  %s2540_s8 = inlined_call_operand.vmem [shape: f32[32,512], index: 8, kind: output, shape index: {}]  }
   0x1   :  { %v29_v0 = vld [vmem:[%s2532_s0] sm:$0xff]  ;;  %v30_v1 = vld [vmem:[%s2532_s0 + $0x8] sm:$0xff]  ;;  %s1375_s0 = smov 17   ;;  %s1378_s11 = smov 1   ;;  %vm276_vm10 = vcmask 1041408   ;;  %vm281_vm11 = vcmask 1042432  }
   0x2   :  { %33 = vst [vmem:[#allocation1] ss:$2 sm:$0xff] %v29_v0  ;;  %s1379_s12 = smov 15   ;;  %s1380_s13 = smov 113   ;;  %v1478_v46 = vand.u32 127, %v101_v44  ;;  %vm290_vm15 = vcmask 1044480  }
   0x3   :  { %35 = vst [vmem:[#allocation1 + $0x10] ss:$2 sm:$0xff] %v30_v1  ;;  %s1381_s14 = smov 112   ;;  %s1382_s15 = smov 111  }
   0x4   :  { %vm116_vm5 = vcmp.lt.s32.totalorder %v1478_v46, 16  ;;  %vm103_vm6 = vcmp.lt.s32.totalorder %v1478_v46, 17  ;;  %vm129_vm7 = vcmp.lt.s32.totalorder %v1478_v46, 15  ;;  %vm142_vm8 = vcmp.lt.s32.totalorder %v1478_v46, 1 }
   0x5   :  { %vm155_vm12 = vcmp.lt.s32.totalorder %v1478_v46, 127  ;;  %vm168_vm13 = vcmp.lt.s32.totalorder %v1478_v46, 113  ;;  %vm181_vm14 = vcmp.lt.s32.totalorder %v1478_v46, 112 }
   0x9   :  { %v37_v2 = vld.sshfl [vmem:[#allocation1 + $0x8] sm:$0xff pattern:$0x75316420]  ;;  %v36_v3 = vld.sshfl [vmem:[#allocation1] sm:$0xff pattern:$0x75316420] }
   0xa   :  { %v38_v4 = vld.sshfl [vmem:[#allocation1 + $0x10] sm:$0xff pattern:$0x75316420]  ;;  %v52_v5 = vsel %vm44_vm0, %v37_v2, 0.0  ;;  %v45_v6 = vsel %vm44_vm0, %v36_v3, 0.0 }
   0xb   :  { %v53_v7 = vrot.slane %v52_v5, 4  ;;  %v59_v8 = vsel %vm44_vm0, %v38_v4, 0.0  ;;  %v39_v9 = vld.sshfl [vmem:[#allocation1 + $0x18] sm:$0xff pattern:$0x75316420]  ;;  %v46_v10 = vrot.slane %v45_v6, 4 }
   0xc   :  { %v60_v11 = vrot.slane %v59_v8, 4  ;;  %v66_v12 = vsel %vm44_vm0, %v39_v9, 0.0 }
   0xd   :  { %v54_v13 = vadd.f32 %v53_v7, %v52_v5  ;;  %v67_v14 = vrot.slane %v66_v12, 4  ;;  %v47_v16 = vadd.f32 %v46_v10, %v45_v6 }
   0xe   :  { %v61_v15 = vadd.f32 %v60_v11, %v59_v8 }
   0xf   :  { %v55_v17 = vrot.slane %v54_v13, 2  ;;  %v68_v18 = vadd.f32 %v67_v14, %v66_v12  ;;  %v48_v23 = vrot.slane %v47_v16, 2 }
  0x10   :  { %v62_v19 = vrot.slane %v61_v15, 2 }
  0x11   :  { %v56_v20 = vadd.f32 %v55_v17, %v54_v13  ;;  %v69_v21 = vrot.slane %v68_v18, 2  ;;  %v49_v30 = vadd.f32 %v48_v23, %v47_v16 }
  0x12   :  { %v63_v22 = vadd.f32 %v62_v19, %v61_v15 }
  0x13   :  { %v57_v24 = vrot.slane %v56_v20, 1  ;;  %v70_v25 = vadd.f32 %v69_v21, %v68_v18  ;;  %v50_v36 = vrot.slane %v49_v30, 1  ;;  %v315_v18 = vld [vmem:[%s2533_s3] sm:$0xff] }
  0x14   :  { %v64_v26 = vrot.slane %v63_v22, 1 }
  0x15   :  { %v58_v27 = vadd.f32 %v57_v24, %v56_v20  ;;  %v71_v28 = vrot.slane %v70_v25, 1  ;;  %v51_v39 = vadd.f32 %v50_v36, %v49_v30  ;;  %v1383_v24 = vmov 0  }
  0x16   :  { %v65_v29 = vadd.f32 %v64_v26, %v63_v22  ;;  %1368 = vset.pattern.permute.xlu0 %v1383_v24  ;;  %1367 = vset.pattern.permute.xlu2 %v1383_v24 }
  0x17   :  { %vm74_vm1 = vcmp.gt.f32.partialorder %v58_v27, 0.0  ;;  %v72_v31 = vadd.f32 %v71_v28, %v70_v25  ;;  %vm73_vm4 = vcmp.gt.f32.partialorder %v51_v39, 0.0  ;;  %1369 = vset.pattern.permute.xlu1 %v1383_v24 }
  0x18   :  { %vm75_vm2 = vcmp.gt.f32.partialorder %v65_v29, 0.0  ;;  %v1439_v33 = vsel %vm74_vm1, 1.0, %v1374_v32  ;;  %v1454_v40 = vsel %vm73_vm4, 1.0, %v1374_v32  ;;  %vm295_vm1 = vcmask 1045504  }
  0x19   :  { %v1441_v34 = vsel %vm75_vm2, 1.0, %v1374_v32  ;;  %vm76_vm3 = vcmp.gt.f32.partialorder %v72_v31, 0.0  ;;  %v1357_v42 = vpack.i.bf16 %v1454_v40, %v1439_v33  ;;  %vm300_vm2 = vcmask 1046528  }
  0x1a   :  { %v1302_v35 = vpack.i.bf16 %v1441_v34, %v1439_v33  ;;  %v1445_v37 = vsel %vm76_vm3, 1.0, %v1374_v32  ;;  %vm194_vm3 = vcmp.lt.s32.totalorder %v1478_v46, 111  ;;  %vm327_vm4 = vcmask 72704  }
  0x1b   :  { %v1312_v38 = vpack.i.bf16 %v1445_v37, %v1441_v34  ;;  %v1322_v41 = vpack.i.bf16 %v1445_v37, %v1454_v40 }
  0x1c   :  { %1303 = vrot.lane.b32.xlu1 %v1302_v35, %s1375_s0  ;;  %1293 = vrot.lane.b32.xlu0 %v1302_v35, %s1376_s9 }
  0x1d   :  { %1313 = vrot.lane.b32.xlu2 %v1312_v38, %s1377_s10 }
  0x24   :  { %1308 = vrot.lane.b32.xlu1 %v1302_v35, %s1378_s11  ;;  %1298 = vrot.lane.b32.xlu0 %v1302_v35, %s1379_s12 }
  0x25   :  { %1318 = vrot.lane.b32.xlu2 %v1312_v38, %s1380_s13 }
  0x2c   :  { %1328 = vrot.lane.b32.xlu1 %v1312_v38, %s1381_s14  ;;  %1323 = vrot.lane.b32.xlu0 %v1322_v41, %s1376_s9 }
  0x2d   :  { %1333 = vrot.lane.b32.xlu2 %v1322_v41, %s1379_s12 }
  0x34   :  { %1343 = vrot.lane.b32.xlu1 %v1322_v41, %s1375_s0  ;;  %1338 = vrot.lane.b32.xlu0 %v1312_v38, %s1382_s15 }
  0x35   :  { %1348 = vrot.lane.b32.xlu2 %v1322_v41, %s1378_s11 }
  0x3c   :  { %1358 = vrot.lane.b32.xlu1 %v1357_v42, %s1380_s13  ;;  %1353 = vrot.lane.b32.xlu0 %v1357_v42, %s1377_s10 }
  0x3d   :  { %1363 = vrot.lane.b32.xlu2 %v1357_v42, %s1381_s14 }
  0x44   :  { %186 = vrot.lane.b32.xlu1 %v1454_v40, %s1382_s15  ;;  %188 = vrot.lane.b32.xlu0 %v1439_v33, %s1382_s15 }
  0x4c   :  { %319 = vperm.xlu0 %1368, %v315_v18  }
  0x77   :  { %v1474_v43 = vpop.permute.xlu2 %1313 }
  0x78   :  { %v1316_v63 = vunpack.i.h.bf16 %v1474_v43  ;;  %v1315_v2 = vunpack.i.l.bf16 %v1474_v43  ;;  %v90_v43 = vld [vmem:[%s2534_s1 + $0x28] sm:$0x1] }
  0x7a   :  { %v156_v11 = vsel %vm155_vm12, %v1315_v2, %v1316_v63 }
  0x7b   :  { %v241_v20 = vrot.slane %v156_v11, 3 }
  0x7f   :  { %v1476_v45 = vpop.permute.xlu2 %1318 }
  0x80   :  { %v1321_v5 = vunpack.i.h.bf16 %v1476_v45  ;;  %v1320_v6 = vunpack.i.l.bf16 %v1476_v45 }
  0x82   :  { %v169_v14 = vsel %vm168_vm13, %v1320_v6, %v1321_v5 }
  0x83   :  { %v253_v25 = vrot.slane %v169_v14, 2 }
  0x87   :  { %v1493_v52 = vpop.permute.xlu2 %1333 }
  0x88   :  { %v1336_v15 = vunpack.i.h.bf16 %v1493_v52  ;;  %v1335_v26 = vunpack.i.l.bf16 %v1493_v52 }
  0x8a   :  { %v133_v32 = vsel %vm129_vm7, %v1336_v15, %v1335_v26 }
  0x8b   :  { %v215_v18 = vrot.slane %v133_v32, 6 }
  0x8e   :  { %v1480_v47 = vpop.permute.xlu1 %1303  ;;  %v1482_v48 = vpop.permute.xlu0 %1293 }
  0x8f   :  { %v1296_v49 = vunpack.i.h.bf16 %v1482_v48  ;;  %v1295_v50 = vunpack.i.l.bf16 %v1482_v48  ;;  %v1306_v53 = vunpack.i.h.bf16 %v1480_v47  ;;  %v1305_v54 = vunpack.i.l.bf16 %v1480_v47  ;;  %v1526_v9 = vpop.permute.xlu2 %1348 }
  0x90   :  { %v1351_v29 = vunpack.i.h.bf16 %v1526_v9  ;;  %v1350_v30 = vunpack.i.l.bf16 %v1526_v9  ;;  %v1612_v9 = vld [vmem:[%s2534_s1 + $0x10] sm:$0xff] }
  0x91   :  { %v118_v51 = vsel %vm116_vm5, %v1295_v50, %v1296_v49  ;;  %v105_v62 = vsel %vm103_vm6, %v1305_v54, %v1306_v53 }
  0x92   :  { %v205_v55 = vrot.slane %v118_v51, 7  ;;  %v146_v41 = vsel %vm142_vm8, %v1351_v29, %v1350_v30 }
  0x94   :  { %v274_v7 = vsel %vm271_vm9, %v105_v62, %v205_v55  ;;  %v91_v55 = vld [vmem:[%s2534_s1 + $0x30] sm:$0x1] }
  0x96   :  { %v1500_v56 = vpop.permute.xlu1 %1308  ;;  %v1299_v57 = vpop.permute.xlu0 %1298 }
  0x97   :  { %v1311_v58 = vunpack.i.h.bf16 %v1500_v56  ;;  %v1310_v59 = vunpack.i.l.bf16 %v1500_v56  ;;  %v1301_v60 = vunpack.i.h.bf16 %v1299_v57  ;;  %v1300_v61 = vunpack.i.l.bf16 %v1299_v57  ;;  %v316_v57 = vld [vmem:[%s2533_s3 + $0x8] sm:$0xff]  ;;  %v1630_v56 = vld [vmem:[%s2535_s2] sm:$0xff] }
  0x98   :  { %324 = vperm.xlu2 %1367, %v316_v57  }
  0x99   :  { %v144_v0 = vsel %vm142_vm8, %v1310_v59, %v1311_v58  ;;  %v131_v1 = vsel %vm129_vm7, %v1300_v61, %v1301_v60  ;;  %v130_v27 = vsel %vm129_vm7, %v1301_v60, %v1336_v15  ;;  %v132_v38 = vsel %vm129_vm7, %v1335_v26, %v1300_v61 }
  0x9a   :  { %v229_v3 = vrot.slane %v144_v0, 5  ;;  %v217_v4 = vrot.slane %v131_v1, 6  ;;  %v218_v39 = vrot.slane %v130_v27, 6  ;;  %v1364_v0 = vpop.permute.xlu2 %1363  ;;  %v143_v47 = vsel %vm142_vm8, %v1311_v58, %v1351_v29 }
  0x9b   :  { %v1366_v11 = vunpack.i.h.bf16 %v1364_v0 }
  0x9c   :  { %v279_v8 = vsel %vm276_vm10, %v274_v7, %v217_v4 }
  0x9d   :  { %v284_v10 = vsel %vm281_vm11, %v279_v8, %v229_v3 }
  0x9e   :  { %v1536_v12 = vpop.permute.xlu1 %1328  ;;  %v1324_v13 = vpop.permute.xlu0 %1323  ;;  %v288_v19 = vsel %vm44_vm0, %v284_v10, %v1441_v34 }
  0x9f   :  { %v1331_v16 = vunpack.i.h.bf16 %v1536_v12  ;;  %v1330_v17 = vunpack.i.l.bf16 %v1536_v12  ;;  %v1326_v22 = vunpack.i.h.bf16 %v1324_v13  ;;  %v1325_v23 = vunpack.i.l.bf16 %v1324_v13 }
  0xa0   :  { %v293_v28 = vsel %vm290_vm15, %v288_v19, %v241_v20  ;;  %v1365_v13 = vunpack.i.l.bf16 %v1364_v0  ;;  %v216_v19 = vrot.slane %v132_v38, 6 }
  0xa1   :  { %v182_v21 = vsel %vm181_vm14, %v1330_v17, %v1331_v16  ;;  %v117_v34 = vsel %vm116_vm5, %v1296_v49, %v1326_v22  ;;  %v119_v35 = vsel %vm116_vm5, %v1325_v23, %v1295_v50  ;;  %v120_v36 = vsel %vm116_vm5, %v1326_v22, %v1325_v23 }
  0xa2   :  { %v265_v31 = vrot.slane %v182_v21, 1  ;;  %v298_v49 = vsel %vm295_vm1, %v293_v28, %v253_v25  ;;  %v206_v60 = vrot.slane %v117_v34, 7  ;;  %v203_v61 = vrot.slane %v120_v36, 7 }
  0xa3   :  { %v204_v62 = vrot.slane %v119_v35, 7  ;;  %v184_v20 = vsel %vm181_vm14, %v1366_v11, %v1365_v13  ;;  %v230_v22 = vrot.slane %v143_v47, 5  ;;  %v185_v32 = vsel %vm181_vm14, %v1331_v16, %v1366_v11 }
  0xa4   :  { %v303_v1 = vsel %vm300_vm2, %v298_v49, %v265_v31  ;;  %v183_v34 = vsel %vm181_vm14, %v1365_v13, %v1330_v17  ;;  %v263_v35 = vrot.slane %v184_v20, 1 }
  0xa5   :  { %v307_v58 = vmul.f32 %v303_v1, %v1612_v9  ;;  %v264_v1 = vrot.slane %v183_v34, 1 }
  0xa6   :  { %v1344_v42 = vpop.permute.xlu1 %1343  ;;  %v1581_v44 = vpop.permute.xlu0 %1338 }
  0xa7   :  { %v1346_v51 = vunpack.i.h.bf16 %v1344_v42  ;;  %v1345_v48 = vunpack.i.l.bf16 %v1344_v42  ;;  %v1341_v52 = vunpack.i.h.bf16 %v1581_v44  ;;  %v1340_v50 = vunpack.i.l.bf16 %v1581_v44 }
  0xa9   :  { %v104_v3 = vsel %vm103_vm6, %v1306_v53, %v1346_v51  ;;  %v106_v4 = vsel %vm103_vm6, %v1345_v48, %v1305_v54  ;;  %v107_v7 = vsel %vm103_vm6, %v1346_v51, %v1345_v48  ;;  %v195_v8 = vsel %vm194_vm3, %v1340_v50, %v1341_v52 }
  0xaa   :  { %v145_v53 = vsel %vm142_vm8, %v1350_v30, %v1310_v59  ;;  %v275_v54 = vsel %vm271_vm9, %v104_v3, %v206_v60  ;;  %v311_v10 = vmul.f32 %v195_v8, %v91_v55  ;;  %v272_v14 = vsel %vm271_vm9, %v107_v7, %v203_v61 }
  0xab   :  { %v273_v15 = vsel %vm271_vm9, %v106_v4, %v204_v62  ;;  %v227_v59 = vrot.slane %v146_v41, 5  ;;  %v280_v21 = vsel %vm276_vm10, %v275_v54, %v218_v39  ;;  %v228_v23 = vrot.slane %v145_v53, 5  ;;  %v314_v53 = vld [vmem:[%s2535_s2 + $0x8] sm:$0xff] }
  0xac   :  { %1226 = vmatpush.msk.msra.mxu2 %vm271_vm9, %v311_v10  ;;  %v277_v24 = vsel %vm276_vm10, %v272_v14, %v215_v18  ;;  %v278_v25 = vsel %vm276_vm10, %v273_v15, %v216_v19  ;;  %v285_v36 = vsel %vm281_vm11, %v280_v21, %v230_v22  ;;  %v266_v55 = vrot.slane %v185_v32, 1  ;;  %v1706_v10 = vld [vmem:[%s2534_s1] sm:$0xff]  ;;  %v1719_v15 = vld [vmem:[%s2534_s1 + $0x18] sm:$0xff] }
  0xad   :  { %v282_v12 = vsel %vm281_vm11, %v277_v24, %v227_v59  ;;  %v283_v49 = vsel %vm281_vm11, %v278_v25, %v228_v23  ;;  %v289_v48 = vsel %vm44_vm0, %v285_v36, %v1445_v37 }
  0xae   :  { %v1359_v26 = vpop.permute.xlu1 %1358  ;;  %v1354_v27 = vpop.permute.xlu0 %1353  ;;  %407 = vmatpush.msra.mxu2 %v307_v58  ;;  %v286_v37 = vsel %vm44_vm0, %v282_v12, %v1454_v40  ;;  %v287_v62 = vsel %vm44_vm0, %v283_v49, %v1439_v33  ;;  %vm778_vm0 = vcmask 130048  }
  0xaf   :  { %v1361_v28 = vunpack.i.h.bf16 %v1359_v26  ;;  %v1360_v29 = vunpack.i.l.bf16 %v1359_v26  ;;  %v1356_v30 = vunpack.i.h.bf16 %v1354_v27  ;;  %v1355_v31 = vunpack.i.l.bf16 %v1354_v27  ;;  %1227 = vmatmul.msk.f32.vlgmr.msra.gmra.mxu2 %vm327_vm4, %v1630_v56 }
  0xb1   :  { %v172_v38 = vsel %vm168_vm13, %v1321_v5, %v1361_v28  ;;  %v171_v39 = vsel %vm168_vm13, %v1361_v28, %v1360_v29  ;;  %v159_v16 = vsel %vm155_vm12, %v1316_v63, %v1356_v30  ;;  %v170_v17 = vsel %vm168_vm13, %v1360_v29, %v1320_v6  ;;  %v89_v6 = vld [vmem:[%s2534_s1 + $0x20] sm:$0x1] }
  0xb2   :  { %v254_v41 = vrot.slane %v172_v38, 2  ;;  %v242_v42 = vrot.slane %v159_v16, 3  ;;  %v251_v5 = vrot.slane %v171_v39, 2  ;;  %v157_v51 = vsel %vm155_vm12, %v1355_v31, %v1315_v2  ;;  %v92_v2 = vld [vmem:[%s2534_s1 + $0x38] sm:$0x1] }
  0xb3   :  { %v158_v63 = vsel %vm155_vm12, %v1356_v30, %v1355_v31  ;;  %v240_v57 = vrot.slane %v157_v51, 3  ;;  %v252_v61 = vrot.slane %v170_v17, 2 }
  0xb4   :  { %v239_v45 = vrot.slane %v158_v63, 3  ;;  %v294_v60 = vsel %vm290_vm15, %v289_v48, %v242_v42 }
  0xb5   :  { %v299_v0 = vsel %vm295_vm1, %v294_v60, %v254_v41  ;;  %v292_v8 = vsel %vm290_vm15, %v287_v62, %v240_v57 }
  0xb6   :  { %v187_v3 = vpop.permute.xlu1 %186  ;;  %v189_v4 = vpop.permute.xlu0 %188  ;;  %v291_v7 = vsel %vm290_vm15, %v286_v37, %v239_v45  ;;  %v304_v47 = vsel %vm300_vm2, %v299_v0, %v266_v55  ;;  %v297_v18 = vsel %vm295_vm1, %v292_v8, %v252_v61 }
  0xb7   :  { %v198_v33 = vsel %vm194_vm3, %v1341_v52, %v187_v3  ;;  %v196_v40 = vsel %vm194_vm3, %v189_v4, %v1340_v50  ;;  %v197_v54 = vsel %vm194_vm3, %v187_v3, %v189_v4  ;;  %v296_v11 = vsel %vm295_vm1, %v291_v7, %v251_v5  ;;  %1228 = vmatmul.msk.f32.gmra.mxu2 %vm327_vm4, %v314_v53  ;;  %v1714_v50 = vld [vmem:[%s2534_s1 + $0x8] sm:$0xff] }
  0xb8   :  { %v309_v13 = vmul.f32 %v197_v54, %v89_v6  ;;  %v310_v14 = vmul.f32 %v196_v40, %v90_v43  ;;  %v312_v52 = vmul.f32 %v198_v33, %v92_v2  ;;  %v301_v44 = vsel %vm300_vm2, %v296_v11, %v263_v35 }
  0xb9   :  { %v305_v19 = vmul.f32 %v301_v44, %v1706_v10  ;;  %v302_v58 = vsel %vm300_vm2, %v297_v18, %v264_v1  ;;  %v308_v20 = vmul.f32 %v304_v47, %v1719_v15 }
  0xba   :  { %1220 = vmatpush.msk.msra.mxu0 %vm271_vm9, %v309_v13  ;;  %1223 = vmatpush.msk.msra.mxu1 %vm271_vm9, %v310_v14  ;;  %v306_v59 = vmul.f32 %v302_v58, %v1714_v50 }
  0xbb   :  { %1229 = vmatpush.msk.msra.mxu3 %vm271_vm9, %v312_v52 }
  0xbc   :  { %361 = vmatpush.msra.mxu0 %v305_v19  ;;  %384 = vmatpush.msra.mxu1 %v306_v59  ;;  %v757_v19 = vld [vmem:[%s2536_s5 + $0x18] sm:$0xff] }
  0xbd   :  { %430 = vmatpush.msra.mxu3 %v308_v20  ;;  %1221 = vmatmul.msk.f32.vlgmr.msra.gmra.mxu0 %vm327_vm4, %v1630_v56 }
  0xbe   :  { %1224 = vmatmul.msk.f32.vlgmr.msra.gmra.mxu1 %vm327_vm4, %v1630_v56  ;;  %1230 = vmatmul.msk.f32.vlgmr.msra.gmra.mxu3 %vm327_vm4, %v1630_v56  ;;  %v320_v21 = vpop.permute.xlu0 %319 }
  0xc5   :  { %1222 = vmatmul.msk.f32.gmra.mxu0 %vm327_vm4, %v314_v53 }
  0xc6   :  { %1225 = vmatmul.msk.f32.gmra.mxu1 %vm327_vm4, %v314_v53  ;;  %1231 = vmatmul.msk.f32.gmra.mxu3 %vm327_vm4, %v314_v53 }
  0xf2   :  { %v325_v34 = vpop.permute.xlu2 %324 }
 0x132   :  { %v409_v56 = vpop.f32.mrf.mxu2 }
 0x133   :  { %v410_v28 = vadd.f32 %v409_v56, %v320_v21 }
 0x135   :  { %v1766_v29 = vmax.f32 %v410_v28, 0.0 }
 0x13a   :  { %v363_v22 = vpop.f32.mrf.mxu0  ;;  %v412_v42 = vpop.f32.mrf.mxu2 }
 0x13b   :  { %v386_v23 = vpop.f32.mrf.mxu1  ;;  %v364_v24 = vadd.f32 %v363_v22, %v320_v21  ;;  %v413_v5 = vadd.f32 %v412_v42, %v325_v34 }
 0x13c   :  { %v387_v25 = vadd.f32 %v386_v23, %v320_v21  ;;  %v754_v23 = vld [vmem:[%s2536_s5] sm:$0xff] }
 0x13d   :  { %v1738_v26 = vmax.f32 %v364_v24, 0.0  ;;  %v1838_v51 = vmax.f32 %v413_v5, 0.0 }
 0x13e   :  { %v1740_v27 = vmax.f32 %v387_v25, 0.0 }
 0x13f   :  { %674 = vrot.lane.b32.xlu2 %v1738_v26, %s1381_s14 }
 0x140   :  { %642 = vrot.lane.b32.xlu0 %v1740_v27, %s1380_s13  ;;  %678 = vrot.lane.b32.xlu1 %v1740_v27, %s1381_s14 }
 0x141   :  { %v432_v30 = vpop.f32.mrf.mxu3 }
 0x142   :  { %v433_v31 = vadd.f32 %v432_v30, %v320_v21  ;;  %v366_v35 = vpop.f32.mrf.mxu0 }
 0x143   :  { %v389_v36 = vpop.f32.mrf.mxu1  ;;  %v367_v38 = vadd.f32 %v366_v35, %v325_v34 }
 0x144   :  { %v1780_v32 = vmax.f32 %v433_v31, 0.0  ;;  %v390_v39 = vadd.f32 %v389_v36, %v325_v34  ;;  %v755_v31 = vld [vmem:[%s2536_s5 + $0x8] sm:$0xff] }
 0x145   :  { %v1800_v16 = vmax.f32 %v367_v38, 0.0 }
 0x146   :  { %2544 = vst [vmem:[#allocation2_spill] sm:$0xff] %v1780_v32  ;;  %v1802_v12 = vmax.f32 %v390_v39, 0.0 }
 0x147   :  { %638 = vrot.lane.b32.xlu2 %v1738_v26, %s1380_s13 }
 0x148   :  { %606 = vrot.lane.b32.xlu0 %v1740_v27, %s1377_s10  ;;  %554 = vrot.lane.b32.xlu1 %v1738_v26, %s1378_s11 }
 0x149   :  { %v435_v63 = vpop.f32.mrf.mxu3 }
 0x14a   :  { %v436_v48 = vadd.f32 %v435_v63, %v325_v34  ;;  %v1045_v34 = vld [vmem:[%s2537_s7 + $0x10] sm:$0xff] }
 0x14c   :  { %v1855_v60 = vmax.f32 %v436_v48, 0.0 }
 0x14e   :  { %2545 = vst [vmem:[#allocation3_spill] sm:$0xff] %v1855_v60 }
 0x14f   :  { %602 = vrot.lane.b32.xlu2 %v1738_v26, %s1377_s10 }
 0x150   :  { %714 = vrot.lane.b32.xlu0 %v1740_v27, %s1382_s15  ;;  %482 = vrot.lane.b32.xlu1 %v1738_v26, %s1376_s9 }
 0x157   :  { %558 = vrot.lane.b32.xlu2 %v1740_v27, %s1378_s11 }
 0x158   :  { %710 = vrot.lane.b32.xlu0 %v1738_v26, %s1382_s15  ;;  %450 = vrot.lane.b32.xlu1 %v1740_v27, %s1375_s0 }
 0x15f   :  { %518 = vrot.lane.b32.xlu2 %v1738_v26, %s1379_s12 }
 0x160   :  { %522 = vrot.lane.b32.xlu0 %v1740_v27, %s1379_s12  ;;  %646 = vrot.lane.b32.xlu1 %v1766_v29, %s1380_s13 }
 0x167   :  { %486 = vrot.lane.b32.xlu2 %v1740_v27, %s1376_s9 }
 0x168   :  { %446 = vrot.lane.b32.xlu0 %v1738_v26, %s1375_s0  ;;  %610 = vrot.lane.b32.xlu1 %v1766_v29, %s1377_s10 }
 0x16f   :  { %682 = vrot.lane.b32.xlu2 %v1766_v29, %s1381_s14 }
 0x170   :  { %650 = vrot.lane.b32.xlu0 %v1780_v32, %s1380_s13  ;;  %718 = vrot.lane.b32.xlu1 %v1766_v29, %s1382_s15 }
 0x177   :  { %614 = vrot.lane.b32.xlu2 %v1780_v32, %s1377_s10 }
 0x178   :  { %530 = vrot.lane.b32.xlu0 %v1780_v32, %s1379_s12  ;;  %686 = vrot.lane.b32.xlu1 %v1780_v32, %s1381_s14 }
 0x17f   :  { %494 = vrot.lane.b32.xlu2 %v1780_v32, %s1376_s9 }
 0x180   :  { %562 = vrot.lane.b32.xlu0 %v1766_v29, %s1378_s11  ;;  %566 = vrot.lane.b32.xlu1 %v1780_v32, %s1378_s11 }
 0x187   :  { %676 = vrot.lane.b32.xlu2 %v1800_v16, %s1381_s14 }
 0x188   :  { %644 = vrot.lane.b32.xlu0 %v1802_v12, %s1380_s13  ;;  %458 = vrot.lane.b32.xlu1 %v1780_v32, %s1375_s0 }
 0x18f   :  { %640 = vrot.lane.b32.xlu2 %v1800_v16, %s1380_s13 }
 0x190   :  { %608 = vrot.lane.b32.xlu0 %v1802_v12, %s1377_s10  ;;  %680 = vrot.lane.b32.xlu1 %v1802_v12, %s1381_s14 }
 0x197   :  { %604 = vrot.lane.b32.xlu2 %v1800_v16, %s1377_s10 }
 0x198   :  { %716 = vrot.lane.b32.xlu0 %v1802_v12, %s1382_s15  ;;  %556 = vrot.lane.b32.xlu1 %v1800_v16, %s1378_s11 }
 0x199   :  { %v1822_v41 = vpop.permute.xlu2 %674 }
 0x19f   :  { %560 = vrot.lane.b32.xlu2 %v1802_v12, %s1378_s11 }
 0x1a0   :  { %712 = vrot.lane.b32.xlu0 %v1800_v16, %s1382_s15  ;;  %520 = vrot.lane.b32.xlu1 %v1800_v16, %s1379_s12 }
 0x1a1   :  { %v1830_v17 = vpop.permute.xlu2 %638 }
 0x1a7   :  { %524 = vrot.lane.b32.xlu2 %v1802_v12, %s1379_s12 }
 0x1a8   :  { %484 = vrot.lane.b32.xlu0 %v1800_v16, %s1376_s9  ;;  %488 = vrot.lane.b32.xlu1 %v1802_v12, %s1376_s9 }
 0x1a9   :  { %v603_v49 = vpop.permute.xlu2 %602 }
 0x1af   :  { %448 = vrot.lane.b32.xlu2 %v1800_v16, %s1375_s0 }
 0x1b0   :  { %452 = vrot.lane.b32.xlu0 %v1802_v12, %s1375_s0  ;;  %648 = vrot.lane.b32.xlu1 %v1838_v51, %s1380_s13 }
 0x1b1   :  { %v1846_v55 = vpop.permute.xlu2 %558 }
 0x1b2   :  { %v643_v45 = vpop.permute.xlu0 %642  ;;  %v1853_v6 = vpop.permute.xlu1 %678 }
 0x1b3   :  { %v1851_v57 = vsel %vm168_vm13, %v1830_v17, %v643_v45 }
 0x1b7   :  { %684 = vrot.lane.b32.xlu2 %v1838_v51, %s1381_s14 }
 0x1b8   :  { %688 = vrot.lane.b32.xlu0 %v1855_v60, %s1381_s14  ;;  %612 = vrot.lane.b32.xlu1 %v1838_v51, %s1377_s10 }
 0x1b9   :  { %v1863_v61 = vpop.permute.xlu2 %518 }
 0x1ba   :  { %v607_v43 = vpop.permute.xlu0 %606  ;;  %v555_v37 = vpop.permute.xlu1 %554 }
 0x1bb   :  { %v1867_v2 = vsel %vm155_vm12, %v603_v49, %v607_v43  ;;  %v1872_v62 = vsel %vm142_vm8, %v555_v37, %v1846_v55 }
 0x1bf   :  { %526 = vrot.lane.b32.xlu2 %v1766_v29, %s1379_s12 }
 0x1c0   :  { %568 = vrot.lane.b32.xlu0 %v1855_v60, %s1378_s11  ;;  %720 = vrot.lane.b32.xlu1 %v1838_v51, %s1382_s15 }
 0x1c1   :  { %v1880_v0 = vpop.permute.xlu2 %486 }
 0x1c2   :  { %v1882_v1 = vpop.permute.xlu0 %714  ;;  %v1884_v3 = vpop.permute.xlu1 %482 }
 0x1c7   :  { %652 = vrot.lane.b32.xlu2 %v1855_v60, %s1380_s13 }
 0x1c8   :  { %460 = vrot.lane.b32.xlu0 %v1855_v60, %s1375_s0  ;;  %616 = vrot.lane.b32.xlu1 %v1855_v60, %s1377_s10 }
 0x1c9   :  { %v683_v4 = vpop.permute.xlu2 %682 }
 0x1ca   :  { %v1892_v7 = vpop.permute.xlu0 %710  ;;  %v1897_v8 = vsel %vm181_vm14, %v1853_v6, %v683_v4  ;;  %v1899_v47 = vpop.permute.xlu1 %450 }
 0x1cf   :  { %532 = vrot.lane.b32.xlu2 %v1855_v60, %s1379_s12 }
 0x1d0   :  { %492 = vrot.lane.b32.xlu0 %v1838_v51, %s1376_s9  ;;  %496 = vrot.lane.b32.xlu1 %v1855_v60, %s1376_s9 }
 0x1d1   :  { %v615_v53 = vpop.permute.xlu2 %614 }
 0x1d2   :  { %v1907_v33 = vpop.permute.xlu0 %522  ;;  %v1911_v40 = vsel %vm155_vm12, %v615_v53, %v603_v49  ;;  %v647_v54 = vpop.permute.xlu1 %646  ;;  %v1044_v49 = vld [vmem:[%s2537_s7 + $0x8] sm:$0xff] }
 0x1d3   :  { %v1915_v11 = vsel %vm168_vm13, %v643_v45, %v647_v54 }
 0x1d7   :  { %564 = vrot.lane.b32.xlu2 %v1838_v51, %s1378_s11 }
 0x1d8   :  { %722 = vrot.lane.b32.xlu0 %v1780_v32, %s1382_s15  ;;  %528 = vrot.lane.b32.xlu1 %v1838_v51, %s1379_s12 }
 0x1d9   :  { %v1923_v13 = vpop.permute.xlu2 %494 }
 0x1da   :  { %v1925_v14 = vpop.permute.xlu0 %446  ;;  %v611_v52 = vpop.permute.xlu1 %610 }
 0x1db   :  { %v1929_v44 = vsel %vm155_vm12, %v611_v52, %v615_v53  ;;  %v1933_v18 = vsel %vm155_vm12, %v607_v43, %v611_v52 }
 0x1df   :  { %490 = vrot.lane.b32.xlu2 %v1766_v29, %s1376_s9 }
 0x1e0   :  { %775 = vperm.xlu0 %1368, %v757_v19   ;;  %724 = vrot.lane.b32.xlu1 %v1855_v60, %s1382_s15 }
 0x1e1   :  { %v1942_v58 = vpop.permute.xlu2 %676 }
 0x1e2   :  { %v651_v59 = vpop.permute.xlu0 %650  ;;  %v1953_v22 = vpop.permute.xlu1 %718 }
 0x1e3   :  { %v1946_v20 = vsel %vm168_vm13, %v647_v54, %v651_v59  ;;  %v1951_v21 = vsel %vm168_vm13, %v651_v59, %v1830_v17  ;;  %v662_v59 = vperm.slane %v1706_v10, 6 }
 0x1e7   :  { %454 = vrot.lane.b32.xlu2 %v1766_v29, %s1375_s0 }
 0x1e8   :  { %760 = vperm.xlu0 %1368, %v754_v23   ;;  %456 = vrot.lane.b32.xlu1 %v1838_v51, %s1375_s0 }
 0x1e9   :  { %v1962_v24 = vpop.permute.xlu2 %640 }
 0x1ea   :  { %v1964_v25 = vpop.permute.xlu0 %530  ;;  %v1972_v28 = vpop.permute.xlu1 %686 }
 0x1eb   :  { %2546 = vst [vmem:[#allocation4_spill] sm:$0xff] %v1964_v25  ;;  %v1970_v56 = vsel %vm129_vm7, %v1964_v25, %v1863_v61  ;;  %v1977_v30 = vsel %vm181_vm14, %v683_v4, %v1972_v28  ;;  %v698_v4 = vperm.slane %v1706_v10, 7 }
 0x1ef   :  { %765 = vperm.xlu2 %1367, %v755_v31  }
 0x1f0   :  { %1059 = vperm.xlu0 %1368, %v1045_v34  }
 0x1f1   :  { %v1985_v35 = vpop.permute.xlu2 %604 }
 0x1f2   :  { %v563_v36 = vpop.permute.xlu0 %562  ;;  %v567_v39 = vpop.permute.xlu1 %566 }
 0x1f3   :  { %v1990_v38 = vsel %vm142_vm8, %v1846_v55, %v563_v36  ;;  %v1994_v17 = vsel %vm142_vm8, %v563_v36, %v567_v39  ;;  %v1998_v42 = vsel %vm142_vm8, %v567_v39, %v555_v37  ;;  %v694_v37 = vsel %vm181_vm14, %v1822_v41, %v1853_v6 }
 0x1f4   :  { %2547 = vst [vmem:[#allocation5_spill] sm:$0xff] %v1994_v17  ;;  %v702_v19 = vmul.f32 %v698_v4, %v694_v37  ;;  %v666_v39 = vmul.f32 %v662_v59, %v1851_v57  ;;  %v699_v57 = vperm.slane %v1714_v50, 7 }
 0x1f6   :  { %v703_v25 = vmul.f32 %v699_v57, %v1897_v8 }
 0x1f7   :  { %1054 = vperm.xlu2 %1367, %v1044_v49   ;;  %v626_v49 = vperm.slane %v1706_v10, 5 }
 0x1f9   :  { %v2003_v5 = vpop.permute.xlu2 %560  ;;  %v630_v37 = vmul.f32 %v626_v49, %v1867_v2 }
 0x1fa   :  { %v645_v63 = vpop.permute.xlu0 %644  ;;  %v2005_v48 = vpop.permute.xlu1 %458 }
 0x1fb   :  { %v659_v52 = vsel %vm168_vm13, %v1962_v24, %v645_v63 }
 0x1fc   :  { %v670_v23 = vmul.f32 %v662_v59, %v659_v52  ;;  %v730_v59 = vsel %vm194_vm3, %v1892_v7, %v1882_v1 }
 0x201   :  { %v2007_v55 = vpop.permute.xlu2 %524 }
 0x202   :  { %v2009_v45 = vpop.permute.xlu0 %608  ;;  %v681_v43 = vpop.permute.xlu1 %680 }
 0x203   :  { %v695_v53 = vsel %vm181_vm14, %v1942_v58, %v681_v43  ;;  %v623_v6 = vsel %vm155_vm12, %v1985_v35, %v2009_v45 }
 0x204   :  { %v706_v54 = vmul.f32 %v698_v4, %v695_v53  ;;  %v634_v4 = vmul.f32 %v626_v49, %v623_v6  ;;  %v590_v53 = vperm.slane %v1706_v10, 4 }
 0x206   :  { %791 = vmatpush.msrb.mxu0 %v706_v54  ;;  %v598_v54 = vmul.f32 %v590_v53, %v1800_v16 }
 0x208   :  { %792 = vmatpush.msrb.mxu0 %v702_v19 }
 0x209   :  { %v2027_v31 = vpop.permute.xlu2 %448 }
 0x20a   :  { %v2029_v34 = vpop.permute.xlu0 %716  ;;  %793 = vmatpush.msrb.mxu0 %v670_v23  ;;  %v2031_v36 = vpop.permute.xlu1 %556  ;;  %v1372_v23 = vld [vmem:[%s2534_s1 + $0x20] ss:$0 sm:$0xff] }
 0x20c   :  { %794 = vmatpush.msrb.mxu0 %v666_v39  ;;  %v594_v39 = vmul.f32 %v590_v53, %v1738_v26 }
 0x20e   :  { %795 = vmatpush.msrb.mxu0 %v634_v4 }
 0x210   :  { %796 = vmatpush.msrb.mxu0 %v630_v37  ;;  %v738_v37 = vmul.f32 %v1372_v23, %v730_v59  ;;  %v2079_v59 = vld [vmem:[%s2538_s4 + $0x18] sm:$0xff] }
 0x211   :  { %v685_v52 = vpop.permute.xlu2 %684 }
 0x212   :  { %v2038_v19 = vpop.permute.xlu0 %712  ;;  %v693_v2 = vsel %vm181_vm14, %v681_v43, %v685_v52  ;;  %797 = vmatpush.msrb.mxu0 %v598_v54  ;;  %v2054_v6 = vpop.permute.xlu1 %520  ;;  %v2065_v54 = vld [vmem:[%s2538_s4 + $0x8] sm:$0xff] }
 0x213   :  { %v731_v16 = vsel %vm194_vm3, %v2038_v19, %v2029_v34  ;;  %v707_v4 = vmul.f32 %v699_v57, %v693_v2 }
 0x214   :  { %v742_v49 = vmul.f32 %v1372_v23, %v731_v16  ;;  %798 = vmatpush.msrb.mxu0 %v594_v39  ;;  %v700_v39 = vperm.slane %v1612_v9, 7 }
 0x215   :  { %849 = vmatpush.msrb.mxu2 %v707_v4 }
 0x216   :  { %834 = vmatpush.msrb.mxu1 %v742_v49  ;;  %v704_v32 = vmul.f32 %v700_v39, %v1977_v30 }
 0x217   :  { %850 = vmatpush.msrb.mxu2 %v703_v25  ;;  %v663_v25 = vperm.slane %v1714_v50, 6 }
 0x218   :  { %835 = vmatpush.msrb.mxu1 %v738_v37  ;;  %v627_v37 = vperm.slane %v1714_v50, 5 }
 0x219   :  { %v2067_v26 = vpop.permute.xlu2 %526  ;;  %1232 = vmatmul.msk.f32.vlgmr.msrb.gmra.mxu1 %vm778_vm0, %v2065_v54  ;;  %v667_v2 = vmul.f32 %v663_v25, %v1915_v11 }
 0x21a   :  { %v2058_v43 = vpop.permute.xlu0 %484  ;;  %v2060_v17 = vpop.permute.xlu1 %488 }
 0x221   :  { %1233 = vmatmul.msk.f32.gmra.mxu1 %vm778_vm0, %v2079_v59  ;;  %v2084_v16 = vpop.permute.xlu2 %652 }
 0x222   :  { %v2071_v53 = vpop.permute.xlu0 %452  ;;  %v649_v8 = vpop.permute.xlu1 %648 }
 0x223   :  { %v657_v23 = vsel %vm168_vm13, %v645_v63, %v649_v8 }
 0x224   :  { %v671_v57 = vmul.f32 %v663_v25, %v657_v23  ;;  %v655_v25 = vsel %vm168_vm13, %v649_v8, %v2084_v16 }
 0x226   :  { %851 = vmatpush.msrb.mxu2 %v671_v57 }
 0x228   :  { %852 = vmatpush.msrb.mxu2 %v667_v2  ;;  %v664_v2 = vperm.slane %v1612_v9, 6 }
 0x22a   :  { %v2087_v49 = vpop.permute.xlu0 %688  ;;  %v2092_v4 = vpop.permute.xlu1 %612  ;;  %v672_v60 = vmul.f32 %v664_v2, %v655_v25  ;;  %v668_v30 = vmul.f32 %v664_v2, %v1946_v20  ;;  %v1373_v25 = vld [vmem:[%s2534_s1 + $0x28] ss:$0 sm:$0xff] }
 0x22b   :  { %v691_v63 = vsel %vm181_vm14, %v685_v52, %v2087_v49  ;;  %v621_v11 = vsel %vm155_vm12, %v2009_v45, %v2092_v4  ;;  %v631_v52 = vmul.f32 %v627_v37, %v1933_v18  ;;  %v2109_v45 = vld [vmem:[%s2538_s4 + $0x28] sm:$0xff]  ;;  %v575_v18 = vsel %vm142_vm8, %v2031_v36, %v2003_v5 }
 0x22c   :  { %v708_v23 = vmul.f32 %v700_v39, %v691_v63  ;;  %v635_v57 = vmul.f32 %v627_v37, %v621_v11  ;;  %v591_v63 = vperm.slane %v1714_v50, 4  ;;  %1234 = vmatmul.msk.f32.gmra.mxu1 %vm778_vm0, %v2109_v45  ;;  %v2119_v39 = vpop.permute.xlu2 %532  ;;  %v578_v37 = vperm.slane %v1706_v10, 3 }
 0x22d   :  { %v579_v11 = vperm.slane %v1714_v50, 3 }
 0x22e   :  { %907 = vmatpush.msra.mxu1 %v708_v23  ;;  %853 = vmatpush.msrb.mxu2 %v635_v57  ;;  %v599_v8 = vmul.f32 %v591_v63, %v1802_v12  ;;  %v595_v20 = vmul.f32 %v591_v63, %v1740_v27  ;;  %v541_v27 = vsel %vm129_vm7, %v2119_v39, %v2054_v6 }
 0x22f   :  { %v587_v2 = vmul.f32 %v579_v11, %v575_v18  ;;  %v582_v63 = vmul.f32 %v578_v37, %v1998_v42  ;;  %v538_v18 = vsel %vm129_vm7, %v1863_v61, %v1907_v33  ;;  %v503_v42 = vsel %vm116_vm5, %v2058_v43, %v2060_v17  ;;  %v2169_v61 = vld [vmem:[%s2538_s4 + $0x38] sm:$0xff] }
 0x230   :  { %908 = vmatpush.msra.mxu1 %v704_v32  ;;  %854 = vmatpush.msrb.mxu2 %v631_v52 }
 0x232   :  { %v2121_v32 = vpop.permute.xlu0 %568  ;;  %909 = vmatpush.msra.mxu1 %v672_v60  ;;  %855 = vmatpush.msrb.mxu2 %v599_v8  ;;  %v2128_v23 = vpop.permute.xlu1 %720  ;;  %v728_v60 = vsel %vm194_vm3, %v1882_v1, %v1953_v22  ;;  %v539_v1 = vsel %vm129_vm7, %v2054_v6, %v2007_v55  ;;  %v583_v8 = vmul.f32 %v579_v11, %v1872_v62 }
 0x233   :  { %v577_v12 = vsel %vm142_vm8, %v2121_v32, %v2031_v36  ;;  %v729_v36 = vsel %vm194_vm3, %v2029_v34, %v2128_v23  ;;  %v542_v34 = vperm.slane %v1706_v10, 2 }
 0x234   :  { %910 = vmatpush.msra.mxu1 %v668_v30  ;;  %v586_v57 = vmul.f32 %v578_v37, %v577_v12  ;;  %856 = vmatpush.msrb.mxu2 %v595_v20  ;;  %v743_v52 = vmul.f32 %v1373_v25, %v729_v36  ;;  %v739_v30 = vmul.f32 %v1373_v25, %v728_v60  ;;  %v543_v12 = vperm.slane %v1714_v50, 2 }
 0x235   :  { %v550_v20 = vmul.f32 %v542_v34, %v541_v27  ;;  %v546_v62 = vmul.f32 %v542_v34, %v1970_v56  ;;  %v628_v37 = vperm.slane %v1612_v9, 5  ;;  %v507_v60 = vperm.slane %v1714_v50, 1  ;;  %1235 = vmatmul.msk.f32.gmra.mxu1 %vm778_vm0, %v2169_v61 }
 0x236   :  { %799 = vmatpush.msrb.mxu0 %v586_v57  ;;  %857 = vmatpush.msrb.mxu2 %v587_v2  ;;  %v551_v6 = vmul.f32 %v543_v12, %v539_v1  ;;  %v547_v25 = vmul.f32 %v543_v12, %v538_v18  ;;  %v502_v56 = vsel %vm116_vm5, %v1884_v3, %v1880_v0 }
 0x237   :  { %892 = vmatpush.msrb.mxu3 %v743_v52  ;;  %v515_v2 = vmul.f32 %v507_v60, %v503_v42  ;;  %v467_v52 = vsel %vm103_vm6, %v2027_v31, %v2071_v53  ;;  %v632_v1 = vmul.f32 %v628_v37, %v1929_v44  ;;  %v511_v34 = vmul.f32 %v507_v60, %v502_v56 }
 0x238   :  { %800 = vmatpush.msrb.mxu0 %v582_v63  ;;  %858 = vmatpush.msrb.mxu2 %v583_v8  ;;  %v2192_v63 = vpop.permute.xlu2 %564  ;;  %v471_v8 = vperm.slane %v1714_v50, 0  ;;  %v580_v50 = vperm.slane %v1612_v9, 3 }
 0x239   :  { %893 = vmatpush.msrb.mxu3 %v739_v30  ;;  %v466_v30 = vsel %vm103_vm6, %v1925_v14, %v1899_v47  ;;  %v573_v44 = vsel %vm142_vm8, %v2003_v5, %v2192_v63  ;;  %v504_v5 = vsel %vm116_vm5, %v1923_v13, %v1884_v3 }
 0x23a   :  { %801 = vmatpush.msrb.mxu0 %v550_v20  ;;  %1236 = vmatmul.msk.f32.vlgmr.msrb.gmra.mxu3 %vm778_vm0, %v2065_v54  ;;  %v2172_v11 = vpop.permute.xlu1 %616  ;;  %v2185_v57 = vpop.permute.xlu0 %460  ;;  %v479_v18 = vmul.f32 %v471_v8, %v467_v52  ;;  %v584_v60 = vmul.f32 %v580_v50, %v1990_v38  ;;  %v468_v38 = vsel %vm103_vm6, %v2005_v48, %v1925_v14  ;;  %v2253_v14 = vld [vmem:[%s2538_s4 + $0x10] sm:$0xff] }
 0x23b   :  { %859 = vmatpush.msrb.mxu2 %v551_v6  ;;  %v619_v36 = vsel %vm155_vm12, %v2092_v4, %v2172_v11  ;;  %v592_v4 = vperm.slane %v1612_v9, 4  ;;  %v475_v6 = vmul.f32 %v471_v8, %v466_v30  ;;  %v469_v56 = vsel %vm103_vm6, %v2185_v57, %v2027_v31 }
 0x23c   :  { %802 = vmatpush.msrb.mxu0 %v546_v62  ;;  %v636_v27 = vmul.f32 %v628_v37, %v619_v36  ;;  %v506_v62 = vperm.slane %v1706_v10, 1  ;;  %v588_v37 = vmul.f32 %v580_v50, %v573_v44 }
 0x23d   :  { %860 = vmatpush.msrb.mxu2 %v547_v25  ;;  %v600_v12 = vmul.f32 %v592_v4, %v1838_v51  ;;  %v596_v42 = vmul.f32 %v592_v4, %v1766_v29  ;;  %v2214_v51 = vld [vmem:[%s2538_s4] sm:$0xff]  ;;  %v696_v4 = vsel %vm181_vm14, %v1972_v28, %v1822_v41  ;;  %v508_v41 = vperm.slane %v1612_v9, 1 }
 0x23e   :  { %911 = vmatpush.msra.mxu1 %v636_v27  ;;  %v510_v3 = vmul.f32 %v506_v62, %v504_v5  ;;  %v470_v27 = vperm.slane %v1706_v10, 0  ;;  %v697_v10 = vsel %vm181_vm14, %v2087_v49, %v1942_v58  ;;  %v665_v28 = vperm.slane %v1719_v15, 6 }
 0x23f   :  { %861 = vmatpush.msrb.mxu2 %v515_v2  ;;  %v544_v2 = vperm.slane %v1612_v9, 2  ;;  %v625_v5 = vsel %vm155_vm12, %v2172_v11, %v1985_v35 }
 0x240   :  { %912 = vmatpush.msra.mxu1 %v632_v1  ;;  %v478_v31 = vmul.f32 %v470_v27, %v469_v56  ;;  %v701_v1 = vperm.slane %v1719_v15, 7  ;;  %v474_v49 = vmul.f32 %v470_v27, %v468_v38  ;;  %v2268_v8 = vpop.permute.xlu2 %490  ;;  %v2548_v38 = vld [vmem:[#allocation3_spill] sm:$0xff] }
 0x241   :  { %862 = vmatpush.msrb.mxu2 %v511_v34  ;;  %v536_v34 = vsel %vm129_vm7, %v1907_v33, %v2067_v26 }
 0x242   :  { %1237 = vmatmul.msk.f32.gmra.mxu3 %vm778_vm0, %v2079_v59  ;;  %913 = vmatpush.msra.mxu1 %v600_v12  ;;  %v2208_v20 = vpop.permute.xlu1 %496  ;;  %v2231_v36 = vpop.permute.xlu0 %492  ;;  %v2270_v12 = vmul.f32 %v701_v1, %v697_v10  ;;  %v2284_v44 = vmul.f32 %v701_v1, %v696_v4  ;;  %v2348_v1 = vld [vmem:[%s2538_s4 + $0x30] sm:$0xff] }
 0x243   :  { %863 = vmatpush.msrb.mxu2 %v479_v18  ;;  %v505_v25 = vsel %vm116_vm5, %v2208_v20, %v2058_v43  ;;  %v756_v43 = vld [vmem:[%s2536_s5 + $0x10] sm:$0xff]  ;;  %v501_v33 = vsel %vm116_vm5, %v2060_v17, %v2231_v36  ;;  %v661_v18 = vsel %vm168_vm13, %v2084_v16, %v1962_v24  ;;  %v500_v17 = vsel %vm116_vm5, %v1880_v0, %v2268_v8  ;;  %v1371_v0 = vld [vmem:[%s2534_s1 + $0x38] ss:$0 sm:$0xff] }
 0x244   :  { %914 = vmatpush.msra.mxu1 %v596_v42  ;;  %v514_v29 = vmul.f32 %v506_v62, %v505_v25  ;;  %770 = vperm.xlu1 %1369, %v756_v43   ;;  %v516_v50 = vmul.f32 %v508_v41, %v501_v33  ;;  %v2291_v24 = vmul.f32 %v665_v28, %v661_v18  ;;  %v1370_v16 = vld [vmem:[%s2534_s1 + $0x30] ss:$0 sm:$0xff]  ;;  %v629_v42 = vperm.slane %v1719_v15, 5  ;;  %v2310_v25 = vld [vmem:[%s2538_s4 + $0x20] sm:$0xff]  ;;  %v2551_v18 = vld [vmem:[#allocation4_spill] sm:$0xff] }
 0x245   :  { %864 = vmatpush.msrb.mxu2 %v475_v6  ;;  %v512_v62 = vmul.f32 %v508_v41, %v500_v17  ;;  %v534_v41 = vsel %vm129_vm7, %v2067_v26, %v2551_v18  ;;  %v509_v26 = vperm.slane %v1719_v15, 1  ;;  %v2444_v18 = vld [vmem:[%s2539_s6] sm:$0xff] }
 0x246   :  { %865 = vmatmul.f32.vlgmr.msrb.gmra.mxu2 %v2214_v51  ;;  %915 = vmatpush.msra.mxu1 %v588_v37  ;;  %v2328_v27 = vmul.f32 %v629_v42, %v625_v5 }
 0x247   :  { %803 = vmatpush.msrb.mxu0 %v514_v29  ;;  %v2313_v29 = vmul.f32 %v665_v28, %v1951_v21 }
 0x248   :  { %916 = vmatpush.msra.mxu1 %v584_v60  ;;  %v455_v43 = vpop.permute.xlu2 %454 }
 0x249   :  { %804 = vmatpush.msrb.mxu0 %v510_v3 }
 0x24a   :  { %1238 = vmatmul.msk.f32.gmra.mxu3 %vm778_vm0, %v2109_v45  ;;  %v2248_v52 = vpop.permute.xlu1 %528  ;;  %v723_v6 = vpop.permute.xlu0 %722 }
 0x24b   :  { %805 = vmatpush.msrb.mxu0 %v478_v31  ;;  %v537_v58 = vsel %vm129_vm7, %v2007_v55, %v2248_v52  ;;  %v548_v55 = vmul.f32 %v544_v2, %v536_v34  ;;  %v726_v60 = vsel %vm194_vm3, %v1953_v22, %v723_v6  ;;  %v732_v56 = vsel %vm194_vm3, %v723_v6, %v1892_v7 }
 0x24c   :  { %v552_v30 = vmul.f32 %v544_v2, %v537_v58  ;;  %v740_v22 = vmul.f32 %v1370_v16, %v726_v60  ;;  %v593_v7 = vperm.slane %v1719_v15, 4  ;;  %v571_v2 = vsel %vm142_vm8, %v2192_v63, %v2121_v32  ;;  %v2549_v63 = vld [vmem:[#allocation2_spill] sm:$0xff] }
 0x24d   :  { %806 = vmatpush.msrb.mxu0 %v474_v49  ;;  %v581_v34 = vperm.slane %v1719_v15, 3  ;;  %v464_v58 = vsel %vm103_vm6, %v1899_v47, %v455_v43  ;;  %v535_v47 = vsel %vm129_vm7, %v2248_v52, %v2119_v39  ;;  %v1043_v39 = vld [vmem:[%s2537_s7] sm:$0xff]  ;;  %v499_v52 = vsel %vm116_vm5, %v2231_v36, %v2208_v20 }
 0x24e   :  { %868 = vmatmul.f32.gmra.mxu2 %v2253_v14  ;;  %807 = vmatmul.f32.vlgmr.msrb.gmra.mxu0 %v2214_v51  ;;  %v601_v31 = vmul.f32 %v593_v7, %v2548_v38  ;;  %v517_v6 = vmul.f32 %v509_v26, %v499_v52 }
 0x24f   :  { %917 = vmatpush.msra.mxu1 %v552_v30  ;;  %965 = vmatpush.msra.mxu0 %v2270_v12  ;;  %v589_v4 = vmul.f32 %v581_v34, %v571_v2 }
 0x250   :  { %1049 = vperm.xlu1 %1369, %v1043_v39  }
 0x251   :  { %918 = vmatpush.msra.mxu1 %v548_v55  ;;  %966 = vmatpush.msra.mxu0 %v2284_v44  ;;  %v545_v55 = vperm.slane %v1719_v15, 2 }
 0x252   :  { %1239 = vmatmul.msk.f32.gmra.mxu3 %vm778_vm0, %v2169_v61  ;;  %v725_v37 = vpop.permute.xlu1 %724 }
 0x253   :  { %919 = vmatpush.msra.mxu1 %v516_v50  ;;  %967 = vmatpush.msra.mxu0 %v2291_v24  ;;  %v727_v35 = vsel %vm194_vm3, %v2128_v23, %v725_v37  ;;  %v733_v11 = vsel %vm194_vm3, %v725_v37, %v2038_v19  ;;  %v2334_v23 = vmul.f32 %v629_v42, %v1911_v40  ;;  %v472_v40 = vperm.slane %v1612_v9, 0 }
 0x254   :  { %v744_v21 = vmul.f32 %v1370_v16, %v727_v35  ;;  %v745_v3 = vmul.f32 %v1371_v0, %v733_v11  ;;  %v741_v19 = vmul.f32 %v1371_v0, %v732_v56  ;;  %v597_v9 = vmul.f32 %v593_v7, %v2549_v63  ;;  %v2430_v35 = vpop.permute.xlu2 %765 }
 0x255   :  { %920 = vmatpush.msra.mxu1 %v512_v62  ;;  %968 = vmatpush.msra.mxu0 %v2313_v29  ;;  %v476_v30 = vmul.f32 %v472_v40, %v464_v58  ;;  %v553_v28 = vmul.f32 %v545_v55, %v535_v47  ;;  %v549_v17 = vmul.f32 %v545_v55, %v534_v41 }
 0x256   :  { %871 = vmatmul.f32.gmra.mxu2 %v2310_v25  ;;  %810 = vmatmul.f32.gmra.mxu0 %v2253_v14  ;;  %v498_v50 = vsel %vm116_vm5, %v2268_v8, %v1923_v13  ;;  %v1046_v13 = vld [vmem:[%s2537_s7 + $0x18] sm:$0xff]  ;;  %vm1067_vm5 = vcmask 261120  }
 0x257   :  { %950 = vmatpush.msra.mxu3 %v744_v21  ;;  %969 = vmatpush.msra.mxu0 %v2328_v27  ;;  %v513_v36 = vmul.f32 %v509_v26, %v498_v50  ;;  %v1040_v26 = vld [vmem:[%s2539_s6 + $0x8] sm:$0xff] }
 0x258   :  { %1008 = vmatpush.msra.mxu2 %v745_v3  ;;  %1064 = vperm.xlu1 %1369, %v1046_v13  }
 0x259   :  { %951 = vmatpush.msra.mxu3 %v740_v22  ;;  %970 = vmatpush.msra.mxu0 %v2334_v23 }
 0x25a   :  { %1009 = vmatpush.msra.mxu2 %v741_v19  ;;  %v457_v10 = vpop.permute.xlu1 %456  ;;  %1240 = vmatmul.msk.f32.vlgmr.msra.gmra.mxu3 %vm778_vm0, %v2065_v54 }
 0x25b   :  { %1280 = vmatpush.msrb.mxu3 %v745_v3  ;;  %971 = vmatpush.msra.mxu0 %v601_v31  ;;  %v465_v32 = vsel %vm103_vm6, %v2071_v53, %v457_v10  ;;  %v2550_v53 = vld [vmem:[#allocation5_spill] sm:$0xff]  ;;  %v463_v20 = vsel %vm103_vm6, %v457_v10, %v2185_v57 }
 0x25c   :  { %v480_v49 = vmul.f32 %v472_v40, %v465_v32  ;;  %v585_v33 = vmul.f32 %v581_v34, %v2550_v53 }
 0x25d   :  { %1281 = vmatpush.msrb.mxu3 %v741_v19  ;;  %972 = vmatpush.msra.mxu0 %v597_v9 }
 0x25e   :  { %874 = vmatmul.f32.gmra.mxu2 %v2348_v1  ;;  %813 = vmatmul.f32.gmra.mxu0 %v2310_v25 }
 0x25f   :  { %921 = vmatpush.msra.mxu1 %v480_v49  ;;  %973 = vmatpush.msra.mxu0 %v589_v4 }
 0x261   :  { %922 = vmatpush.msra.mxu1 %v476_v30  ;;  %974 = vmatpush.msra.mxu0 %v585_v33 }
 0x262   :  { %923 = vmatmul.f32.vlgmr.msra.gmra.mxu1 %v2214_v51  ;;  %1241 = vmatmul.msk.f32.gmra.mxu3 %vm778_vm0, %v2079_v59 }
 0x263   :  { %1264 = vmatpush.msrb.mxu1 %v2270_v12  ;;  %975 = vmatpush.msra.mxu0 %v553_v28  ;;  %v473_v12 = vperm.slane %v1719_v15, 0 }
 0x265   :  { %1265 = vmatpush.msrb.mxu1 %v2284_v44  ;;  %976 = vmatpush.msra.mxu0 %v549_v17  ;;  %v481_v8 = vmul.f32 %v473_v12, %v463_v20 }
 0x266   :  { %1244 = vmatmul.msk.f32.vlgmr.msra.gmra.mxu2 %vm778_vm0, %v2065_v54  ;;  %816 = vmatmul.f32.gmra.mxu0 %v2348_v1  ;;  %v462_v54 = vsel %vm103_vm6, %v455_v43, %v2005_v48 }
 0x267   :  { %1266 = vmatpush.msrb.mxu1 %v2291_v24  ;;  %977 = vmatpush.msra.mxu0 %v517_v6  ;;  %v477_v57 = vmul.f32 %v473_v12, %v462_v54 }
 0x269   :  { %1267 = vmatpush.msrb.mxu1 %v2313_v29  ;;  %978 = vmatpush.msra.mxu0 %v513_v36 }
 0x26a   :  { %926 = vmatmul.f32.gmra.mxu1 %v2253_v14  ;;  %1242 = vmatmul.msk.f32.gmra.mxu3 %vm778_vm0, %v2109_v45 }
 0x26b   :  { %1268 = vmatpush.msrb.mxu1 %v2328_v27  ;;  %979 = vmatpush.msra.mxu0 %v481_v8 }
 0x26d   :  { %1269 = vmatpush.msrb.mxu1 %v2334_v23  ;;  %980 = vmatpush.msra.mxu0 %v477_v57 }
 0x26e   :  { %1245 = vmatmul.msk.f32.gmra.mxu2 %vm778_vm0, %v2079_v59  ;;  %981 = vmatmul.f32.vlgmr.msra.gmra.mxu0 %v2214_v51 }
 0x26f   :  { %1270 = vmatpush.msrb.mxu1 %v601_v31 }
 0x271   :  { %1271 = vmatpush.msrb.mxu1 %v597_v9 }
 0x272   :  { %929 = vmatmul.f32.gmra.mxu1 %v2310_v25  ;;  %1243 = vmatmul.msk.f32.gmra.mxu3 %vm778_vm0, %v2169_v61 }
 0x273   :  { %1272 = vmatpush.msrb.mxu1 %v589_v4 }
 0x275   :  { %1273 = vmatpush.msrb.mxu1 %v585_v33 }
 0x276   :  { %1246 = vmatmul.msk.f32.gmra.mxu2 %vm778_vm0, %v2109_v45  ;;  %984 = vmatmul.f32.gmra.mxu0 %v2253_v14 }
 0x277   :  { %1274 = vmatpush.msrb.mxu1 %v553_v28 }
 0x279   :  { %1275 = vmatpush.msrb.mxu1 %v549_v17 }
 0x27a   :  { %932 = vmatmul.f32.gmra.mxu1 %v2348_v1  ;;  %1247 = vmatmul.msk.f32.vlgmr.msrb.gmra.mxu3 %vm778_vm0, %v2169_v61  ;;  %v2423_v61 = vpop.permute.xlu0 %775 }
 0x27b   :  { %1276 = vmatpush.msrb.mxu1 %v517_v6 }
 0x27d   :  { %1277 = vmatpush.msrb.mxu1 %v513_v36 }
 0x27e   :  { %987 = vmatmul.f32.gmra.mxu0 %v2310_v25 }
 0x27f   :  { %1278 = vmatpush.msrb.mxu1 %v481_v8 }
 0x281   :  { %1279 = vmatpush.msrb.mxu1 %v477_v57 }
 0x282   :  { %990 = vmatmul.f32.vlgmr.msrb.gmra.mxu1 %v2348_v1  ;;  %v2434_v3 = vpop.permute.xlu0 %760 }
 0x296   :  { %v837_v46 = vpop.f32.mrf.mxu1 }
 0x29e   :  { %v840_v48 = vpop.f32.mrf.mxu1 }
 0x2a9   :  { %v843_v51 = vpop.f32.mrf.mxu1 }
 0x2b2   :  { %v846_v0 = vpop.f32.mrf.mxu1 }
 0x2b6   :  { %v2425_v37 = vpop.permute.xlu1 %770 }
 0x2bd   :  { %v895_v15 = vpop.f32.mrf.mxu3 }
 0x2c5   :  { %v898_v59 = vpop.f32.mrf.mxu3 }
 0x2c9   :  { %v866_v45 = vpop.f32.mrf.mxu2 }
 0x2ca   :  { %v867_v22 = vadd.f32 %v866_v45, %v2434_v3 }
 0x2cb   :  { %v808_v14 = vpop.f32.mrf.mxu0 }
 0x2cc   :  { %v809_v40 = vadd.f32 %v808_v14, %v2434_v3  ;;  %v896_v32 = vadd.f32 %v895_v15, %v867_v22 }
 0x2cd   :  { %v901_v44 = vpop.f32.mrf.mxu3 }
 0x2ce   :  { %v838_v30 = vadd.f32 %v837_v46, %v809_v40  ;;  %v1024_v33 = vmax.f32 %v896_v32, 0.0 }
 0x2d0   :  { %v1023_v28 = vmax.f32 %v838_v30, 0.0 }
 0x2d1   :  { %v869_v24 = vpop.f32.mrf.mxu2 }
 0x2d2   :  { %v870_v56 = vadd.f32 %v869_v24, %v2430_v35 }
 0x2d3   :  { %v811_v16 = vpop.f32.mrf.mxu0 }
 0x2d4   :  { %v812_v43 = vadd.f32 %v811_v16, %v2430_v35  ;;  %v899_v31 = vadd.f32 %v898_v59, %v870_v56 }
 0x2d5   :  { %v904_v42 = vpop.f32.mrf.mxu3 }
 0x2d6   :  { %v841_v9 = vadd.f32 %v840_v48, %v812_v43  ;;  %v1028_v4 = vmax.f32 %v899_v31, 0.0  ;;  %v1041_v48 = vld [vmem:[%s2539_s6 + $0x10] sm:$0xff]  ;;  %v1055_v43 = vpop.permute.xlu2 %1054 }
 0x2d8   :  { %v1027_v41 = vmax.f32 %v841_v9, 0.0 }
 0x2d9   :  { %v872_v62 = vpop.f32.mrf.mxu2 }
 0x2da   :  { %v873_v60 = vadd.f32 %v872_v62, %v2425_v37 }
 0x2db   :  { %v814_v5 = vpop.f32.mrf.mxu0 }
 0x2dc   :  { %v815_v27 = vadd.f32 %v814_v5, %v2425_v37  ;;  %v902_v23 = vadd.f32 %v901_v44, %v873_v60 }
 0x2dd   :  { %v2427_v29 = vpop.f32.mrf.mxu3 }
 0x2de   :  { %v844_v10 = vadd.f32 %v843_v51, %v815_v27  ;;  %v1032_v63 = vmax.f32 %v902_v23, 0.0  ;;  %v1050_v27 = vpop.permute.xlu1 %1049 }
 0x2df   :  { %v924_v25 = vpop.f32.mrf.mxu1 }
 0x2e0   :  { %v1031_v47 = vmax.f32 %v844_v10, 0.0  ;;  %v925_v54 = vadd.f32 %v924_v25, %v2434_v3  ;;  %v1060_v10 = vpop.permute.xlu0 %1059 }
 0x2e1   :  { %v875_v11 = vpop.f32.mrf.mxu2 }
 0x2e2   :  { %v876_v21 = vadd.f32 %v875_v11, %v2423_v61  ;;  %v954_v14 = vadd.f32 %v2427_v29, %v925_v54 }
 0x2e3   :  { %v817_v7 = vpop.f32.mrf.mxu0 }
 0x2e4   :  { %v905_v19 = vadd.f32 %v904_v42, %v876_v21  ;;  %v818_v38 = vadd.f32 %v817_v7, %v2423_v61  ;;  %v1025_v25 = vmax.f32 %v954_v14, 0.0  ;;  %v1042_v21 = vld [vmem:[%s2539_s6 + $0x18] sm:$0xff] }
 0x2e5   :  { %v956_v58 = vpop.f32.mrf.mxu3 }
 0x2e6   :  { %v1036_v2 = vmax.f32 %v905_v19, 0.0  ;;  %v847_v1 = vadd.f32 %v846_v0, %v818_v38 }
 0x2e7   :  { %v927_v34 = vpop.f32.mrf.mxu1 }
 0x2e8   :  { %1121 = vmatpush.msra.mxu3 %v1036_v2  ;;  %v1035_v49 = vmax.f32 %v847_v1, 0.0  ;;  %v928_v12 = vadd.f32 %v927_v34, %v2430_v35 }
 0x2e9   :  { %v1011_v53 = vpop.f32.mrf.mxu2 }
 0x2ea   :  { %1122 = vmatpush.msra.mxu3 %v1032_v63  ;;  %1092 = vmatpush.msra.mxu1 %v1035_v49  ;;  %v957_v46 = vadd.f32 %v956_v58, %v928_v12  ;;  %v1065_v49 = vpop.permute.xlu1 %1064 }
 0x2eb   :  { %v982_v55 = vpop.f32.mrf.mxu0 }
 0x2ec   :  { %1123 = vmatpush.msra.mxu3 %v1028_v4  ;;  %1093 = vmatpush.msra.mxu1 %v1031_v47  ;;  %v1029_v0 = vmax.f32 %v957_v46, 0.0  ;;  %v983_v60 = vadd.f32 %v982_v55, %v2434_v3 }
 0x2ed   :  { %v959_v52 = vpop.f32.mrf.mxu3 }
 0x2ee   :  { %1124 = vmatpush.msra.mxu3 %v1024_v33  ;;  %1094 = vmatpush.msra.mxu1 %v1027_v41 }
 0x2ef   :  { %v930_v39 = vpop.f32.mrf.mxu1  ;;  %1252 = vmatmul.msk.f32.vlgmr.msra.gmra.mxu3 %vm1067_vm5, %v2444_v18 }
 0x2f0   :  { %1095 = vmatpush.msra.mxu1 %v1023_v28  ;;  %v931_v6 = vadd.f32 %v930_v39, %v2425_v37 }
 0x2f1   :  { %1248 = vmatmul.msk.f32.vlgmr.msra.gmra.mxu1 %vm1067_vm5, %v2444_v18  ;;  %v1014_v50 = vpop.f32.mrf.mxu2 }
 0x2f2   :  { %v960_v8 = vadd.f32 %v959_v52, %v931_v6 }
 0x2f3   :  { %v985_v17 = vpop.f32.mrf.mxu0 }
 0x2f4   :  { %v1033_v44 = vmax.f32 %v960_v8, 0.0  ;;  %v986_v42 = vadd.f32 %v985_v17, %v2430_v35 }
 0x2f5   :  { %v962_v36 = vpop.f32.mrf.mxu3 }
 0x2f6   :  { %v1015_v29 = vadd.f32 %v1014_v50, %v986_v42 }
 0x2f7   :  { %v933_v20 = vpop.f32.mrf.mxu1  ;;  %1253 = vmatmul.msk.f32.gmra.mxu3 %vm1067_vm5, %v1040_v26 }
 0x2f8   :  { %v934_v13 = vadd.f32 %v933_v20, %v2423_v61  ;;  %v1030_v35 = vmax.f32 %v1015_v29, 0.0 }
 0x2f9   :  { %1249 = vmatmul.msk.f32.gmra.mxu1 %vm1067_vm5, %v1040_v26  ;;  %v1017_v51 = vpop.f32.mrf.mxu2 }
 0x2fa   :  { %v963_v57 = vadd.f32 %v962_v36, %v934_v13 }
 0x2fb   :  { %v988_v59 = vpop.f32.mrf.mxu0 }
 0x2fc   :  { %v1037_v15 = vmax.f32 %v963_v57, 0.0  ;;  %v989_v45 = vadd.f32 %v988_v59, %v2425_v37 }
 0x2fd   :  { %v1020_v16 = vpop.f32.mrf.mxu3 }
 0x2fe   :  { %1150 = vmatpush.msrb.mxu0 %v1037_v15  ;;  %v1018_v5 = vadd.f32 %v1017_v51, %v989_v45 }
 0x2ff   :  { %v991_v24 = vpop.f32.mrf.mxu1  ;;  %1254 = vmatmul.msk.f32.gmra.mxu3 %vm1067_vm5, %v1041_v48 }
 0x300   :  { %v992_v62 = vadd.f32 %v991_v24, %v2423_v61  ;;  %1151 = vmatpush.msrb.mxu0 %v1033_v44  ;;  %v1034_v56 = vmax.f32 %v1018_v5, 0.0  ;;  %v1012_v61 = vadd.f32 %v1011_v53, %v983_v60 }
 0x301   :  { %1250 = vmatmul.msk.f32.gmra.mxu1 %vm1067_vm5, %v1041_v48 }
 0x302   :  { %v1021_v37 = vadd.f32 %v1020_v16, %v992_v62  ;;  %1152 = vmatpush.msrb.mxu0 %v1029_v0  ;;  %v1026_v3 = vmax.f32 %v1012_v61, 0.0 }
 0x304   :  { %v1038_v11 = vmax.f32 %v1021_v37, 0.0  ;;  %1153 = vmatpush.msrb.mxu0 %v1025_v25 }
 0x305   :  { %1256 = vmatmul.msk.f32.vlgmr.msrb.gmra.mxu0 %vm1067_vm5, %v2444_v18 }
 0x306   :  { %1179 = vmatpush.msrb.mxu2 %v1038_v11 }
 0x307   :  { %1255 = vmatmul.msk.f32.gmra.mxu3 %vm1067_vm5, %v1042_v21 }
 0x308   :  { %1180 = vmatpush.msrb.mxu2 %v1034_v56 }
 0x309   :  { %1251 = vmatmul.msk.f32.gmra.mxu1 %vm1067_vm5, %v1042_v21 }
 0x30a   :  { %1181 = vmatpush.msrb.mxu2 %v1030_v35 }
 0x30c   :  { %1182 = vmatpush.msrb.mxu2 %v1026_v3 }
 0x30d   :  { %1257 = vmatmul.msk.f32.gmra.mxu0 %vm1067_vm5, %v1040_v26  ;;  %1260 = vmatmul.msk.f32.vlgmr.msrb.gmra.mxu2 %vm1067_vm5, %v2444_v18 }
 0x315   :  { %1258 = vmatmul.msk.f32.gmra.mxu0 %vm1067_vm5, %v1041_v48  ;;  %1261 = vmatmul.msk.f32.gmra.mxu2 %vm1067_vm5, %v1040_v26 }
 0x31d   :  { %1259 = vmatmul.msk.f32.gmra.mxu0 %vm1067_vm5, %v1042_v21  ;;  %1262 = vmatmul.msk.f32.gmra.mxu2 %vm1067_vm5, %v1041_v48 }
 0x325   :  { %1263 = vmatmul.msk.f32.gmra.mxu2 %vm1067_vm5, %v1042_v21 }
 0x36e   :  { %v1097_v22 = vpop.f32.mrf.mxu1 }
 0x36f   :  { %v1098_v23 = vadd.f32 %v1097_v22, %v1050_v27 }
 0x371   :  { %1196 = vst [vmem:[%s2540_s8] sm:$0xff] %v1098_v23 }
 0x372   :  { %v1126_v19 = vpop.f32.mrf.mxu3 }
 0x373   :  { %v1127_v7 = vadd.f32 %v1126_v19, %v1050_v27 }
 0x375   :  { %1197 = vst [vmem:[%s2540_s8 + $0x8] sm:$0xff] %v1127_v7 }
 0x376   :  { %v1100_v38 = vpop.f32.mrf.mxu1 }
 0x377   :  { %v1101_v31 = vadd.f32 %v1100_v38, %v1055_v43 }
 0x379   :  { %1200 = vst [vmem:[%s2540_s8 + $0x20] sm:$0xff] %v1101_v31 }
 0x37a   :  { %v1129_v2 = vpop.f32.mrf.mxu3 }
 0x37b   :  { %v1130_v40 = vadd.f32 %v1129_v2, %v1055_v43 }
 0x37d   :  { %1201 = vst [vmem:[%s2540_s8 + $0x28] sm:$0xff] %v1130_v40 }
 0x37e   :  { %v1103_v1 = vpop.f32.mrf.mxu1 }
 0x37f   :  { %v1104_v34 = vadd.f32 %v1103_v1, %v1060_v10 }
 0x381   :  { %1204 = vst [vmem:[%s2540_s8 + $0x40] sm:$0xff] %v1104_v34 }
 0x382   :  { %v1132_v58 = vpop.f32.mrf.mxu3  ;;  %v1155_v32 = vpop.f32.mrf.mxu0 }
 0x383   :  { %v1133_v63 = vadd.f32 %v1132_v58, %v1060_v10  ;;  %v1156_v9 = vadd.f32 %v1155_v32, %v1050_v27 }
 0x385   :  { %1205 = vst [vmem:[%s2540_s8 + $0x48] sm:$0xff] %v1133_v63 }
 0x386   :  { %1198 = vst [vmem:[%s2540_s8 + $0x10] sm:$0xff] %v1156_v9  ;;  %v1106_v4 = vpop.f32.mrf.mxu1 }
 0x387   :  { %v1107_v30 = vadd.f32 %v1106_v4, %v1065_v49 }
 0x389   :  { %1208 = vst [vmem:[%s2540_s8 + $0x60] sm:$0xff] %v1107_v30 }
 0x38a   :  { %v1135_v47 = vpop.f32.mrf.mxu3  ;;  %v1158_v53 = vpop.f32.mrf.mxu0 }
 0x38b   :  { %v1136_v33 = vadd.f32 %v1135_v47, %v1065_v49  ;;  %v1159_v55 = vadd.f32 %v1158_v53, %v1055_v43 }
 0x38d   :  { %1209 = vst [vmem:[%s2540_s8 + $0x68] sm:$0xff] %v1136_v33 }
 0x38e   :  { %1202 = vst [vmem:[%s2540_s8 + $0x30] sm:$0xff] %v1159_v55 }
 0x390   :  { %v1184_v18 = vpop.f32.mrf.mxu2 }
 0x391   :  { %v1185_v41 = vadd.f32 %v1184_v18, %v1050_v27 }
 0x392   :  { %v1161_v28 = vpop.f32.mrf.mxu0 }
 0x393   :  { %1199 = vst [vmem:[%s2540_s8 + $0x18] sm:$0xff] %v1185_v41  ;;  %v1162_v39 = vadd.f32 %v1161_v28, %v1060_v10 }
 0x395   :  { %1206 = vst [vmem:[%s2540_s8 + $0x50] sm:$0xff] %v1162_v39 }
 0x398   :  { %v1187_v52 = vpop.f32.mrf.mxu2 }
 0x399   :  { %v1188_v17 = vadd.f32 %v1187_v52, %v1055_v43 }
 0x39a   :  { %v1164_v26 = vpop.f32.mrf.mxu0 }
 0x39b   :  { %1203 = vst [vmem:[%s2540_s8 + $0x38] sm:$0xff] %v1188_v17  ;;  %v1165_v50 = vadd.f32 %v1164_v26, %v1065_v49 }
 0x39d   :  { %1210 = vst [vmem:[%s2540_s8 + $0x70] sm:$0xff] %v1165_v50 }
 0x3a0   :  { %v1190_v6 = vpop.f32.mrf.mxu2 }
 0x3a1   :  { %v1191_v20 = vadd.f32 %v1190_v6, %v1060_v10 }
 0x3a3   :  { %1207 = vst [vmem:[%s2540_s8 + $0x58] sm:$0xff] %v1191_v20 }
 0x3a8   :  { %v1193_v36 = vpop.f32.mrf.mxu2 }
 0x3a9   :  { %v1194_v12 = vadd.f32 %v1193_v36, %v1065_v49 }
 0x3ab   :  { %1211 = vst [vmem:[%s2540_s8 + $0x78] sm:$0xff] %v1194_v12 }

</bundles_post_ra>
